<compile_context>
chip_gen: v6e
topology: v6e:2x2x1
jax: 0.10.0
libtpu: 0.0.40
codegen_flags: <defaults>
</compile_context>

<pallas_src>
import jax
import jax.numpy as jnp
from jax import lax
from jax.experimental import pallas as pl
from jax.experimental.pallas import tpu as pltpu

# Small, module-consistent sizes.
B, WIN, NFEAT = 2, 8, 4          # batch, window_size, n_features
KSIZE = 7                        # ConvLayer kernel_size
GRU_HID = 32                     # gru_hid_dim (small for the demo)
FC_HID = 32                      # forecast_hid_dim
OUT_DIM = 4                      # out_dim
PAD = (KSIZE - 1) // 2           # nn.ConstantPad1d((k-1)//2, 0.0), both sides


def _vmem():
    return pl.BlockSpec(memory_space=pltpu.MemorySpace.VMEM)


# ----------------------------------------------------------------------------
# Fused kernel
# ----------------------------------------------------------------------------
def mtad_gat_fused_kernel(x_ref, wcat_ref, cbias_ref,
                          wih_ref, bih_ref, whh_ref, bhh_ref,
                          fc1w_ref, fc1b_ref, fc2w_ref, fc2b_ref,
                          o_ref):
    # x_ref:   (B, W, F)
    # wcat:    (K*F, F)   im2col conv weight (tap-major rows, out-feature cols)
    # cbias:   (1, F)
    # wih:     (F, 3H) = diag(scale) @ corr_adj @ W_ih^T, gate blocks [r|z|n]
    # bih/bhh: (1, 3H)    whh: (H, 3H)
    # fc1w: (H, FC)  fc1b: (1, FC)  fc2w: (FC, OUT)  fc2b: (1, OUT)
    Bn, W, F = x_ref.shape
    KF = wcat_ref.shape[0]
    K = KF // F
    pad = (K - 1) // 2
    H = whh_ref.shape[0]

    # ---- ConvLayer: register-resident im2col + ONE MXU matmul --------------
    # Build time-major row blocks (row index = t*B + b) so the hoisted GRU
    # input projection below is already in recurrence-consumption order.
    x = x_ref[...]                                       # (B, W, F), one load
    cols = [x[:, s, :] for s in range(W)]                # (B, F) per time step
    zero_col = jnp.zeros((Bn, F), jnp.float32)
    row_blocks = []
    for t in range(W):                                   # static time loop
        taps = []
        for k in range(K):                               # static tap loop
            s = t + k - pad                              # "same" zero padding
            taps.append(cols[s] if 0 <= s < W else zero_col)
        row_blocks.append(jnp.concatenate(taps, axis=-1))      # (B, K*F)
    xs = jnp.concatenate(row_blocks, axis=0)             # (W*B, K*F) time-major

    conv = jnp.maximum(
        jnp.dot(xs, wcat_ref[...], preferred_element_type=jnp.float32)
        + cbias_ref[...], 0.0)                           # ReLU, (W*B, F)

    # ---- WeightLayer + GRU input projection (adjacency folded into wih) ----
    gi = (jnp.dot(conv, wih_ref[...], preferred_element_type=jnp.float32)
          + bih_ref[...])                                # (W*B, 3H) time-major

    # ---- GRU recurrence: ONE fused gate matmul per step, fully unrolled ----
    # TODO(synk): for production W (~100) use lax.fori_loop(..., unroll=4..8)
    #             to bound vreg live ranges instead of a full static unroll.
    whh = whh_ref[...]
    bhh = bhh_ref[...]
    h = jnp.zeros((Bn, H), jnp.float32)
    for t in range(W):                                   # static W=8 -> unroll
        gh = jnp.dot(h, whh, preferred_element_type=jnp.float32) + bhh  # (B, 3H)
        gi_t = gi[t * Bn:(t + 1) * Bn, :]                # contiguous sublane slab
        r = jax.nn.sigmoid(gi_t[:, 0:H] + gh[:, 0:H])
        z = jax.nn.sigmoid(gi_t[:, H:2 * H] + gh[:, H:2 * H])
        n = jnp.tanh(gi_t[:, 2 * H:3 * H] + r * gh[:, 2 * H:3 * H])
        h = (1.0 - z) * n + z * h                        # h_end after last t

    # ---- Forecasting_Model (n_layers=1, dropout = identity at eval) --------
    hid = jnp.maximum(
        jnp.dot(h, fc1w_ref[...], preferred_element_type=jnp.float32)
        + fc1b_ref[...], 0.0)
    # TODO(synk): pad OUT_DIM toward 128 lanes at production sizes for a
    #             lane-dense (unmasked) output store.
    o_ref[...] = (jnp.dot(hid, fc2w_ref[...], preferred_element_type=jnp.float32)
                  + fc2b_ref[...])


# ----------------------------------------------------------------------------
# Parameter init (kernel-ready folded layouts + unfolded copies for the ref)
# ----------------------------------------------------------------------------
def init_params(key):
    ks = jax.random.split(key, 6)
    f32 = jnp.float32

    # Conv1d(n_features, n_features, K), kaiming-style scale, bias = 0.
    conv_w_oik = (jax.random.normal(ks[0], (NFEAT, NFEAT, KSIZE), f32)
                  * jnp.sqrt(2.0 / (NFEAT * KSIZE)))
    conv_wcat = jnp.transpose(conv_w_oik, (2, 1, 0)).reshape(
        KSIZE * NFEAT, NFEAT)                            # im2col weight (K*F, F)
    conv_b = jnp.zeros((1, NFEAT), f32)

    # Correlation adjacency (symmetric, row-normalized) + WeightLayer scale.
    a = jax.random.uniform(ks[1], (NFEAT, NFEAT), f32)
    corr = (a + a.T) * 0.5
    corr_adj = corr / jnp.sum(corr, axis=1, keepdims=True)
    w_scale = jnp.ones((1, NFEAT), f32)
    adj_scaled = w_scale.reshape(NFEAT, 1) * corr_adj    # diag(scale) @ adj

    # GRU params (PyTorch shapes (3H, F)/(3H, H), orthogonal gain 0.5 ->
    # deterministic small normal stand-in), biases = 0, gate order (r, z, n).
    wih_full = jax.random.normal(ks[2], (3 * GRU_HID, NFEAT), f32) * 0.05
    whh_full = jax.random.normal(ks[3], (3 * GRU_HID, GRU_HID), f32) * 0.05

    # Unfolded per-gate views for the pure-JAX reference.
    gru_wih = jnp.transpose(wih_full.reshape(3, GRU_HID, NFEAT), (0, 2, 1))
    gru_whh = jnp.transpose(whh_full.reshape(3, GRU_HID, GRU_HID), (0, 2, 1))
    gru_bih = jnp.zeros((3, 1, GRU_HID), f32)
    gru_bhh = jnp.zeros((3, 1, GRU_HID), f32)

    # Kernel-side fused layouts: (F, 3H) / (H, 3H) with gate blocks [r|z|n]
    # along lanes; WeightLayer scale + adjacency folded into the input weights.
    wih_cat = wih_full.T                                 # (F, 3H)
    whh_cat = whh_full.T                                 # (H, 3H)
    gru_wih_fold = adj_scaled @ wih_cat                  # (F, 3H)
    gru_bih_cat = jnp.zeros((1, 3 * GRU_HID), f32)
    gru_bhh_cat = jnp.zeros((1, 3 * GRU_HID), f32)

    # Forecasting FC layers, xavier_normal gain=0.1, biases = 0.
    def xavier(k, fan_in, fan_out):
        std = 0.1 * jnp.sqrt(2.0 / (fan_in + fan_out))
        return jax.random.normal(k, (fan_in, fan_out), f32) * std

    fc1_w = xavier(ks[4], GRU_HID, FC_HID)
    fc1_b = jnp.zeros((1, FC_HID), f32)
    fc2_w = xavier(ks[5], FC_HID, OUT_DIM)
    fc2_b = jnp.zeros((1, OUT_DIM), f32)

    return dict(conv_wcat=conv_wcat, conv_b=conv_b,
                corr_adj=corr_adj, w_scale=w_scale,
                gru_wih=gru_wih, gru_whh=gru_whh,
                gru_bih=gru_bih, gru_bhh=gru_bhh,
                gru_wih_fold=gru_wih_fold, gru_whh_cat=whh_cat,
                gru_bih_cat=gru_bih_cat, gru_bhh_cat=gru_bhh_cat,
                fc1_w=fc1_w, fc1_b=fc1_b, fc2_w=fc2_w, fc2_b=fc2_b)


@jax.jit
def mtad_gat_forward(x, params):
    Bn, _, _ = x.shape
    return pl.pallas_call(
        mtad_gat_fused_kernel,
        out_shape=jax.ShapeDtypeStruct((Bn, OUT_DIM), jnp.float32),
        in_specs=[_vmem()] * 11,
        out_specs=_vmem(),
    )(x, params['conv_wcat'], params['conv_b'],
      params['gru_wih_fold'], params['gru_bih_cat'],
      params['gru_whh_cat'], params['gru_bhh_cat'],
      params['fc1_w'], params['fc1_b'], params['fc2_w'], params['fc2_b'])


# ----------------------------------------------------------------------------
# Pure-JAX reference (unfolded params) for correctness checking
# ----------------------------------------------------------------------------
def reference_forward(x, p):
    xp = jnp.pad(x, ((0, 0), (PAD, PAD), (0, 0)))
    wk = p['conv_wcat'].reshape(KSIZE, NFEAT, NFEAT)
    acc = jnp.zeros((x.shape[0], WIN, NFEAT), jnp.float32)
    for k in range(KSIZE):
        acc = acc + jnp.einsum('bti,io->bto', xp[:, k:k + WIN, :], wk[k])
    conv_out = jnp.maximum(acc + p['conv_b'][None], 0.0)
    feat = jnp.einsum('btf,fg->btg', conv_out * p['w_scale'][None],
                      p['corr_adj'])

    def step(h, x_t):
        r = jax.nn.sigmoid(x_t @ p['gru_wih'][0] + p['gru_bih'][0]
                           + h @ p['gru_whh'][0] + p['gru_bhh'][0])
        z = jax.nn.sigmoid(x_t @ p['gru_wih'][1] + p['gru_bih'][1]
                           + h @ p['gru_whh'][1] + p['gru_bhh'][1])
        n = jnp.tanh(x_t @ p['gru_wih'][2] + p['gru_bih'][2]
                     + r * (h @ p['gru_whh'][2] + p['gru_bhh'][2]))
        return (1.0 - z) * n + z * h, None

    h_end, _ = lax.scan(step,
                        jnp.zeros((x.shape[0], GRU_HID), jnp.float32),
                        jnp.transpose(feat, (1, 0, 2)))
    hid = jnp.maximum(h_end @ p['fc1_w'] + p['fc1_b'], 0.0)
    return hid @ p['fc2_w'] + p['fc2_b']


if __name__ == "__main__":
    key = jax.random.PRNGKey(0)
    k_x, k_p = jax.random.split(key)
    x = jax.random.normal(k_x, (B, WIN, NFEAT), jnp.float32)
    params = init_params(k_p)

    preds = jax.block_until_ready(mtad_gat_forward(x, params))

    ref = reference_forward(x, params)
    assert preds.shape == (B, OUT_DIM)
    assert bool(jnp.allclose(preds, ref, atol=1e-4, rtol=1e-4)), \
        "Pallas output does not match JAX reference"
    print("KERNEL_OK")
</pallas_src>

<mosaic_0001>
module attributes {stable_mosaic.version = 11 : i64} {
  func.func @mtad_gat_fused_kernel(%arg0: memref<2x8x4xf32, #tpu.memory_space<vmem>>, %arg1: memref<28x4xf32, #tpu.memory_space<vmem>>, %arg2: memref<1x4xf32, #tpu.memory_space<vmem>>, %arg3: memref<4x96xf32, #tpu.memory_space<vmem>>, %arg4: memref<1x96xf32, #tpu.memory_space<vmem>>, %arg5: memref<32x96xf32, #tpu.memory_space<vmem>>, %arg6: memref<1x96xf32, #tpu.memory_space<vmem>>, %arg7: memref<32x32xf32, #tpu.memory_space<vmem>>, %arg8: memref<1x32xf32, #tpu.memory_space<vmem>>, %arg9: memref<32x4xf32, #tpu.memory_space<vmem>>, %arg10: memref<1x4xf32, #tpu.memory_space<vmem>>, %arg11: memref<2x4xf32, #tpu.memory_space<vmem>>) attributes {dimension_semantics = [], scalar_prefetch = 0 : i64, scratch_operands = 0 : i64, tpu.core_type = #tpu.core_type<tc>} {
    %c0 = arith.constant 0 : index
    %c0_0 = arith.constant 0 : index
    %c0_1 = arith.constant 0 : index
    %0 = vector.load %arg0[%c0, %c0_0, %c0_1] : memref<2x8x4xf32, #tpu.memory_space<vmem>>, vector<2x8x4xf32>
    %1 = vector.extract_strided_slice %0 {offsets = [0, 0, 0], sizes = [2, 1, 4], strides = [1, 1, 1]} : vector<2x8x4xf32> to vector<2x1x4xf32>
    %2 = vector.shape_cast %1 : vector<2x1x4xf32> to vector<2x4xf32>
    %3 = vector.extract_strided_slice %0 {offsets = [0, 1, 0], sizes = [2, 1, 4], strides = [1, 1, 1]} : vector<2x8x4xf32> to vector<2x1x4xf32>
    %4 = vector.shape_cast %3 : vector<2x1x4xf32> to vector<2x4xf32>
    %5 = vector.extract_strided_slice %0 {offsets = [0, 2, 0], sizes = [2, 1, 4], strides = [1, 1, 1]} : vector<2x8x4xf32> to vector<2x1x4xf32>
    %6 = vector.shape_cast %5 : vector<2x1x4xf32> to vector<2x4xf32>
    %7 = vector.extract_strided_slice %0 {offsets = [0, 3, 0], sizes = [2, 1, 4], strides = [1, 1, 1]} : vector<2x8x4xf32> to vector<2x1x4xf32>
    %8 = vector.shape_cast %7 : vector<2x1x4xf32> to vector<2x4xf32>
    %9 = vector.extract_strided_slice %0 {offsets = [0, 4, 0], sizes = [2, 1, 4], strides = [1, 1, 1]} : vector<2x8x4xf32> to vector<2x1x4xf32>
    %10 = vector.shape_cast %9 : vector<2x1x4xf32> to vector<2x4xf32>
    %11 = vector.extract_strided_slice %0 {offsets = [0, 5, 0], sizes = [2, 1, 4], strides = [1, 1, 1]} : vector<2x8x4xf32> to vector<2x1x4xf32>
    %12 = vector.shape_cast %11 : vector<2x1x4xf32> to vector<2x4xf32>
    %13 = vector.extract_strided_slice %0 {offsets = [0, 6, 0], sizes = [2, 1, 4], strides = [1, 1, 1]} : vector<2x8x4xf32> to vector<2x1x4xf32>
    %14 = vector.shape_cast %13 : vector<2x1x4xf32> to vector<2x4xf32>
    %15 = vector.extract_strided_slice %0 {offsets = [0, 7, 0], sizes = [2, 1, 4], strides = [1, 1, 1]} : vector<2x8x4xf32> to vector<2x1x4xf32>
    %16 = vector.shape_cast %15 : vector<2x1x4xf32> to vector<2x4xf32>
    %cst = arith.constant 0.000000e+00 : f32
    %17 = vector.broadcast %cst : f32 to vector<2x4xf32>
    %18 = tpu.concatenate %17, %17, %17, %2, %4, %6, %8 in 1 : vector<2x4xf32>, vector<2x4xf32>, vector<2x4xf32>, vector<2x4xf32>, vector<2x4xf32>, vector<2x4xf32>, vector<2x4xf32> -> vector<2x28xf32>
    %19 = tpu.concatenate %17, %17, %2, %4, %6, %8, %10 in 1 : vector<2x4xf32>, vector<2x4xf32>, vector<2x4xf32>, vector<2x4xf32>, vector<2x4xf32>, vector<2x4xf32>, vector<2x4xf32> -> vector<2x28xf32>
    %20 = tpu.concatenate %17, %2, %4, %6, %8, %10, %12 in 1 : vector<2x4xf32>, vector<2x4xf32>, vector<2x4xf32>, vector<2x4xf32>, vector<2x4xf32>, vector<2x4xf32>, vector<2x4xf32> -> vector<2x28xf32>
    %21 = tpu.concatenate %2, %4, %6, %8, %10, %12, %14 in 1 : vector<2x4xf32>, vector<2x4xf32>, vector<2x4xf32>, vector<2x4xf32>, vector<2x4xf32>, vector<2x4xf32>, vector<2x4xf32> -> vector<2x28xf32>
    %22 = tpu.concatenate %4, %6, %8, %10, %12, %14, %16 in 1 : vector<2x4xf32>, vector<2x4xf32>, vector<2x4xf32>, vector<2x4xf32>, vector<2x4xf32>, vector<2x4xf32>, vector<2x4xf32> -> vector<2x28xf32>
    %23 = tpu.concatenate %6, %8, %10, %12, %14, %16, %17 in 1 : vector<2x4xf32>, vector<2x4xf32>, vector<2x4xf32>, vector<2x4xf32>, vector<2x4xf32>, vector<2x4xf32>, vector<2x4xf32> -> vector<2x28xf32>
    %24 = tpu.concatenate %8, %10, %12, %14, %16, %17, %17 in 1 : vector<2x4xf32>, vector<2x4xf32>, vector<2x4xf32>, vector<2x4xf32>, vector<2x4xf32>, vector<2x4xf32>, vector<2x4xf32> -> vector<2x28xf32>
    %25 = tpu.concatenate %10, %12, %14, %16, %17, %17, %17 in 1 : vector<2x4xf32>, vector<2x4xf32>, vector<2x4xf32>, vector<2x4xf32>, vector<2x4xf32>, vector<2x4xf32>, vector<2x4xf32> -> vector<2x28xf32>
    %26 = tpu.concatenate %18, %19, %20, %21, %22, %23, %24, %25 in 0 : vector<2x28xf32>, vector<2x28xf32>, vector<2x28xf32>, vector<2x28xf32>, vector<2x28xf32>, vector<2x28xf32>, vector<2x28xf32>, vector<2x28xf32> -> vector<16x28xf32>
    %c0_2 = arith.constant 0 : index
    %c0_3 = arith.constant 0 : index
    %27 = vector.load %arg1[%c0_2, %c0_3] : memref<28x4xf32, #tpu.memory_space<vmem>>, vector<28x4xf32>
    %cst_4 = arith.constant dense<0.000000e+00> : vector<16x4xf32>
    %28 = tpu.matmul %26, %27, %cst_4 {dimension_numbers = #tpu.dot_dimension_numbers<[1], [0], [0], [1], [0, 0, 1, 1], [], []>} : vector<16x28xf32>, vector<28x4xf32>, vector<16x4xf32> -> vector<16x4xf32>
    %c0_5 = arith.constant 0 : index
    %c0_6 = arith.constant 0 : index
    %29 = vector.load %arg2[%c0_5, %c0_6] : memref<1x4xf32, #tpu.memory_space<vmem>>, vector<1x4xf32>
    %30 = vector.broadcast %29 : vector<1x4xf32> to vector<16x4xf32>
    %31 = arith.addf %28, %30 : vector<16x4xf32>
    %cst_7 = arith.constant 0.000000e+00 : f32
    %32 = vector.broadcast %cst_7 : f32 to vector<16x4xf32>
    %33 = arith.maximumf %31, %32 : vector<16x4xf32>
    %c0_8 = arith.constant 0 : index
    %c0_9 = arith.constant 0 : index
    %34 = vector.load %arg3[%c0_8, %c0_9] : memref<4x96xf32, #tpu.memory_space<vmem>>, vector<4x96xf32>
    %cst_10 = arith.constant dense<0.000000e+00> : vector<16x96xf32>
    %35 = tpu.matmul %33, %34, %cst_10 {dimension_numbers = #tpu.dot_dimension_numbers<[1], [0], [0], [1], [0, 0, 1, 1], [], []>} : vector<16x4xf32>, vector<4x96xf32>, vector<16x96xf32> -> vector<16x96xf32>
    %c0_11 = arith.constant 0 : index
    %c0_12 = arith.constant 0 : index
    %36 = vector.load %arg4[%c0_11, %c0_12] : memref<1x96xf32, #tpu.memory_space<vmem>>, vector<1x96xf32>
    %37 = vector.broadcast %36 : vector<1x96xf32> to vector<16x96xf32>
    %38 = arith.addf %35, %37 : vector<16x96xf32>
    %c0_13 = arith.constant 0 : index
    %c0_14 = arith.constant 0 : index
    %39 = vector.load %arg5[%c0_13, %c0_14] : memref<32x96xf32, #tpu.memory_space<vmem>>, vector<32x96xf32>
    %c0_15 = arith.constant 0 : index
    %c0_16 = arith.constant 0 : index
    %40 = vector.load %arg6[%c0_15, %c0_16] : memref<1x96xf32, #tpu.memory_space<vmem>>, vector<1x96xf32>
    %cst_17 = arith.constant 0.000000e+00 : f32
    %41 = vector.broadcast %cst_17 : f32 to vector<2x32xf32>
    %cst_18 = arith.constant dense<0.000000e+00> : vector<2x96xf32>
    %42 = tpu.matmul %41, %39, %cst_18 {dimension_numbers = #tpu.dot_dimension_numbers<[1], [0], [0], [1], [0, 0, 1, 1], [], []>} : vector<2x32xf32>, vector<32x96xf32>, vector<2x96xf32> -> vector<2x96xf32>
    %43 = vector.broadcast %40 : vector<1x96xf32> to vector<2x96xf32>
    %44 = arith.addf %42, %43 : vector<2x96xf32>
    %45 = vector.extract_strided_slice %38 {offsets = [0, 0], sizes = [2, 96], strides = [1, 1]} : vector<16x96xf32> to vector<2x96xf32>
    %46 = vector.extract_strided_slice %45 {offsets = [0, 0], sizes = [2, 32], strides = [1, 1]} : vector<2x96xf32> to vector<2x32xf32>
    %47 = vector.extract_strided_slice %44 {offsets = [0, 0], sizes = [2, 32], strides = [1, 1]} : vector<2x96xf32> to vector<2x32xf32>
    %48 = arith.addf %46, %47 : vector<2x32xf32>
    %49 = arith.negf %48 : vector<2x32xf32>
    %50 = math.exp %49 : vector<2x32xf32>
    %cst_19 = arith.constant 1.000000e+00 : f32
    %51 = vector.broadcast %cst_19 : f32 to vector<2x32xf32>
    %52 = arith.addf %51, %50 : vector<2x32xf32>
    %53 = arith.divf %51, %52 : vector<2x32xf32>
    %54 = vector.extract_strided_slice %45 {offsets = [0, 32], sizes = [2, 32], strides = [1, 1]} : vector<2x96xf32> to vector<2x32xf32>
    %55 = vector.extract_strided_slice %44 {offsets = [0, 32], sizes = [2, 32], strides = [1, 1]} : vector<2x96xf32> to vector<2x32xf32>
    %56 = arith.addf %54, %55 : vector<2x32xf32>
    %57 = arith.negf %56 : vector<2x32xf32>
    %58 = math.exp %57 : vector<2x32xf32>
    %cst_20 = arith.constant 1.000000e+00 : f32
    %59 = vector.broadcast %cst_20 : f32 to vector<2x32xf32>
    %60 = arith.addf %59, %58 : vector<2x32xf32>
    %61 = arith.divf %59, %60 : vector<2x32xf32>
    %62 = vector.extract_strided_slice %45 {offsets = [0, 64], sizes = [2, 32], strides = [1, 1]} : vector<2x96xf32> to vector<2x32xf32>
    %63 = vector.extract_strided_slice %44 {offsets = [0, 64], sizes = [2, 32], strides = [1, 1]} : vector<2x96xf32> to vector<2x32xf32>
    %64 = arith.mulf %53, %63 : vector<2x32xf32>
    %65 = arith.addf %62, %64 : vector<2x32xf32>
    %66 = math.tanh %65 : vector<2x32xf32>
    %cst_21 = arith.constant 1.000000e+00 : f32
    %67 = vector.broadcast %cst_21 : f32 to vector<2x32xf32>
    %68 = arith.subf %67, %61 : vector<2x32xf32>
    %69 = arith.mulf %68, %66 : vector<2x32xf32>
    %70 = arith.mulf %61, %41 : vector<2x32xf32>
    %71 = arith.addf %69, %70 : vector<2x32xf32>
    %cst_22 = arith.constant dense<0.000000e+00> : vector<2x96xf32>
    %72 = tpu.matmul %71, %39, %cst_22 {dimension_numbers = #tpu.dot_dimension_numbers<[1], [0], [0], [1], [0, 0, 1, 1], [], []>} : vector<2x32xf32>, vector<32x96xf32>, vector<2x96xf32> -> vector<2x96xf32>
    %73 = vector.broadcast %40 : vector<1x96xf32> to vector<2x96xf32>
    %74 = arith.addf %72, %73 : vector<2x96xf32>
    %75 = vector.extract_strided_slice %38 {offsets = [2, 0], sizes = [2, 96], strides = [1, 1]} : vector<16x96xf32> to vector<2x96xf32>
    %76 = vector.extract_strided_slice %75 {offsets = [0, 0], sizes = [2, 32], strides = [1, 1]} : vector<2x96xf32> to vector<2x32xf32>
    %77 = vector.extract_strided_slice %74 {offsets = [0, 0], sizes = [2, 32], strides = [1, 1]} : vector<2x96xf32> to vector<2x32xf32>
    %78 = arith.addf %76, %77 : vector<2x32xf32>
    %79 = arith.negf %78 : vector<2x32xf32>
    %80 = math.exp %79 : vector<2x32xf32>
    %cst_23 = arith.constant 1.000000e+00 : f32
    %81 = vector.broadcast %cst_23 : f32 to vector<2x32xf32>
    %82 = arith.addf %81, %80 : vector<2x32xf32>
    %83 = arith.divf %81, %82 : vector<2x32xf32>
    %84 = vector.extract_strided_slice %75 {offsets = [0, 32], sizes = [2, 32], strides = [1, 1]} : vector<2x96xf32> to vector<2x32xf32>
    %85 = vector.extract_strided_slice %74 {offsets = [0, 32], sizes = [2, 32], strides = [1, 1]} : vector<2x96xf32> to vector<2x32xf32>
    %86 = arith.addf %84, %85 : vector<2x32xf32>
    %87 = arith.negf %86 : vector<2x32xf32>
    %88 = math.exp %87 : vector<2x32xf32>
    %cst_24 = arith.constant 1.000000e+00 : f32
    %89 = vector.broadcast %cst_24 : f32 to vector<2x32xf32>
    %90 = arith.addf %89, %88 : vector<2x32xf32>
    %91 = arith.divf %89, %90 : vector<2x32xf32>
    %92 = vector.extract_strided_slice %75 {offsets = [0, 64], sizes = [2, 32], strides = [1, 1]} : vector<2x96xf32> to vector<2x32xf32>
    %93 = vector.extract_strided_slice %74 {offsets = [0, 64], sizes = [2, 32], strides = [1, 1]} : vector<2x96xf32> to vector<2x32xf32>
    %94 = arith.mulf %83, %93 : vector<2x32xf32>
    %95 = arith.addf %92, %94 : vector<2x32xf32>
    %96 = math.tanh %95 : vector<2x32xf32>
    %cst_25 = arith.constant 1.000000e+00 : f32
    %97 = vector.broadcast %cst_25 : f32 to vector<2x32xf32>
    %98 = arith.subf %97, %91 : vector<2x32xf32>
    %99 = arith.mulf %98, %96 : vector<2x32xf32>
    %100 = arith.mulf %91, %71 : vector<2x32xf32>
    %101 = arith.addf %99, %100 : vector<2x32xf32>
    %cst_26 = arith.constant dense<0.000000e+00> : vector<2x96xf32>
    %102 = tpu.matmul %101, %39, %cst_26 {dimension_numbers = #tpu.dot_dimension_numbers<[1], [0], [0], [1], [0, 0, 1, 1], [], []>} : vector<2x32xf32>, vector<32x96xf32>, vector<2x96xf32> -> vector<2x96xf32>
    %103 = vector.broadcast %40 : vector<1x96xf32> to vector<2x96xf32>
    %104 = arith.addf %102, %103 : vector<2x96xf32>
    %105 = vector.extract_strided_slice %38 {offsets = [4, 0], sizes = [2, 96], strides = [1, 1]} : vector<16x96xf32> to vector<2x96xf32>
    %106 = vector.extract_strided_slice %105 {offsets = [0, 0], sizes = [2, 32], strides = [1, 1]} : vector<2x96xf32> to vector<2x32xf32>
    %107 = vector.extract_strided_slice %104 {offsets = [0, 0], sizes = [2, 32], strides = [1, 1]} : vector<2x96xf32> to vector<2x32xf32>
    %108 = arith.addf %106, %107 : vector<2x32xf32>
    %109 = arith.negf %108 : vector<2x32xf32>
    %110 = math.exp %109 : vector<2x32xf32>
    %cst_27 = arith.constant 1.000000e+00 : f32
    %111 = vector.broadcast %cst_27 : f32 to vector<2x32xf32>
    %112 = arith.addf %111, %110 : vector<2x32xf32>
    %113 = arith.divf %111, %112 : vector<2x32xf32>
    %114 = vector.extract_strided_slice %105 {offsets = [0, 32], sizes = [2, 32], strides = [1, 1]} : vector<2x96xf32> to vector<2x32xf32>
    %115 = vector.extract_strided_slice %104 {offsets = [0, 32], sizes = [2, 32], strides = [1, 1]} : vector<2x96xf32> to vector<2x32xf32>
    %116 = arith.addf %114, %115 : vector<2x32xf32>
    %117 = arith.negf %116 : vector<2x32xf32>
    %118 = math.exp %117 : vector<2x32xf32>
    %cst_28 = arith.constant 1.000000e+00 : f32
    %119 = vector.broadcast %cst_28 : f32 to vector<2x32xf32>
    %120 = arith.addf %119, %118 : vector<2x32xf32>
    %121 = arith.divf %119, %120 : vector<2x32xf32>
    %122 = vector.extract_strided_slice %105 {offsets = [0, 64], sizes = [2, 32], strides = [1, 1]} : vector<2x96xf32> to vector<2x32xf32>
    %123 = vector.extract_strided_slice %104 {offsets = [0, 64], sizes = [2, 32], strides = [1, 1]} : vector<2x96xf32> to vector<2x32xf32>
    %124 = arith.mulf %113, %123 : vector<2x32xf32>
    %125 = arith.addf %122, %124 : vector<2x32xf32>
    %126 = math.tanh %125 : vector<2x32xf32>
    %cst_29 = arith.constant 1.000000e+00 : f32
    %127 = vector.broadcast %cst_29 : f32 to vector<2x32xf32>
    %128 = arith.subf %127, %121 : vector<2x32xf32>
    %129 = arith.mulf %128, %126 : vector<2x32xf32>
    %130 = arith.mulf %121, %101 : vector<2x32xf32>
    %131 = arith.addf %129, %130 : vector<2x32xf32>
    %cst_30 = arith.constant dense<0.000000e+00> : vector<2x96xf32>
    %132 = tpu.matmul %131, %39, %cst_30 {dimension_numbers = #tpu.dot_dimension_numbers<[1], [0], [0], [1], [0, 0, 1, 1], [], []>} : vector<2x32xf32>, vector<32x96xf32>, vector<2x96xf32> -> vector<2x96xf32>
    %133 = vector.broadcast %40 : vector<1x96xf32> to vector<2x96xf32>
    %134 = arith.addf %132, %133 : vector<2x96xf32>
    %135 = vector.extract_strided_slice %38 {offsets = [6, 0], sizes = [2, 96], strides = [1, 1]} : vector<16x96xf32> to vector<2x96xf32>
    %136 = vector.extract_strided_slice %135 {offsets = [0, 0], sizes = [2, 32], strides = [1, 1]} : vector<2x96xf32> to vector<2x32xf32>
    %137 = vector.extract_strided_slice %134 {offsets = [0, 0], sizes = [2, 32], strides = [1, 1]} : vector<2x96xf32> to vector<2x32xf32>
    %138 = arith.addf %136, %137 : vector<2x32xf32>
    %139 = arith.negf %138 : vector<2x32xf32>
    %140 = math.exp %139 : vector<2x32xf32>
    %cst_31 = arith.constant 1.000000e+00 : f32
    %141 = vector.broadcast %cst_31 : f32 to vector<2x32xf32>
    %142 = arith.addf %141, %140 : vector<2x32xf32>
    %143 = arith.divf %141, %142 : vector<2x32xf32>
    %144 = vector.extract_strided_slice %135 {offsets = [0, 32], sizes = [2, 32], strides = [1, 1]} : vector<2x96xf32> to vector<2x32xf32>
    %145 = vector.extract_strided_slice %134 {offsets = [0, 32], sizes = [2, 32], strides = [1, 1]} : vector<2x96xf32> to vector<2x32xf32>
    %146 = arith.addf %144, %145 : vector<2x32xf32>
    %147 = arith.negf %146 : vector<2x32xf32>
    %148 = math.exp %147 : vector<2x32xf32>
    %cst_32 = arith.constant 1.000000e+00 : f32
    %149 = vector.broadcast %cst_32 : f32 to vector<2x32xf32>
    %150 = arith.addf %149, %148 : vector<2x32xf32>
    %151 = arith.divf %149, %150 : vector<2x32xf32>
    %152 = vector.extract_strided_slice %135 {offsets = [0, 64], sizes = [2, 32], strides = [1, 1]} : vector<2x96xf32> to vector<2x32xf32>
    %153 = vector.extract_strided_slice %134 {offsets = [0, 64], sizes = [2, 32], strides = [1, 1]} : vector<2x96xf32> to vector<2x32xf32>
    %154 = arith.mulf %143, %153 : vector<2x32xf32>
    %155 = arith.addf %152, %154 : vector<2x32xf32>
    %156 = math.tanh %155 : vector<2x32xf32>
    %cst_33 = arith.constant 1.000000e+00 : f32
    %157 = vector.broadcast %cst_33 : f32 to vector<2x32xf32>
    %158 = arith.subf %157, %151 : vector<2x32xf32>
    %159 = arith.mulf %158, %156 : vector<2x32xf32>
    %160 = arith.mulf %151, %131 : vector<2x32xf32>
    %161 = arith.addf %159, %160 : vector<2x32xf32>
    %cst_34 = arith.constant dense<0.000000e+00> : vector<2x96xf32>
    %162 = tpu.matmul %161, %39, %cst_34 {dimension_numbers = #tpu.dot_dimension_numbers<[1], [0], [0], [1], [0, 0, 1, 1], [], []>} : vector<2x32xf32>, vector<32x96xf32>, vector<2x96xf32> -> vector<2x96xf32>
    %163 = vector.broadcast %40 : vector<1x96xf32> to vector<2x96xf32>
    %164 = arith.addf %162, %163 : vector<2x96xf32>
    %165 = vector.extract_strided_slice %38 {offsets = [8, 0], sizes = [2, 96], strides = [1, 1]} : vector<16x96xf32> to vector<2x96xf32>
    %166 = vector.extract_strided_slice %165 {offsets = [0, 0], sizes = [2, 32], strides = [1, 1]} : vector<2x96xf32> to vector<2x32xf32>
    %167 = vector.extract_strided_slice %164 {offsets = [0, 0], sizes = [2, 32], strides = [1, 1]} : vector<2x96xf32> to vector<2x32xf32>
    %168 = arith.addf %166, %167 : vector<2x32xf32>
    %169 = arith.negf %168 : vector<2x32xf32>
    %170 = math.exp %169 : vector<2x32xf32>
    %cst_35 = arith.constant 1.000000e+00 : f32
    %171 = vector.broadcast %cst_35 : f32 to vector<2x32xf32>
    %172 = arith.addf %171, %170 : vector<2x32xf32>
    %173 = arith.divf %171, %172 : vector<2x32xf32>
    %174 = vector.extract_strided_slice %165 {offsets = [0, 32], sizes = [2, 32], strides = [1, 1]} : vector<2x96xf32> to vector<2x32xf32>
    %175 = vector.extract_strided_slice %164 {offsets = [0, 32], sizes = [2, 32], strides = [1, 1]} : vector<2x96xf32> to vector<2x32xf32>
    %176 = arith.addf %174, %175 : vector<2x32xf32>
    %177 = arith.negf %176 : vector<2x32xf32>
    %178 = math.exp %177 : vector<2x32xf32>
    %cst_36 = arith.constant 1.000000e+00 : f32
    %179 = vector.broadcast %cst_36 : f32 to vector<2x32xf32>
    %180 = arith.addf %179, %178 : vector<2x32xf32>
    %181 = arith.divf %179, %180 : vector<2x32xf32>
    %182 = vector.extract_strided_slice %165 {offsets = [0, 64], sizes = [2, 32], strides = [1, 1]} : vector<2x96xf32> to vector<2x32xf32>
    %183 = vector.extract_strided_slice %164 {offsets = [0, 64], sizes = [2, 32], strides = [1, 1]} : vector<2x96xf32> to vector<2x32xf32>
    %184 = arith.mulf %173, %183 : vector<2x32xf32>
    %185 = arith.addf %182, %184 : vector<2x32xf32>
    %186 = math.tanh %185 : vector<2x32xf32>
    %cst_37 = arith.constant 1.000000e+00 : f32
    %187 = vector.broadcast %cst_37 : f32 to vector<2x32xf32>
    %188 = arith.subf %187, %181 : vector<2x32xf32>
    %189 = arith.mulf %188, %186 : vector<2x32xf32>
    %190 = arith.mulf %181, %161 : vector<2x32xf32>
    %191 = arith.addf %189, %190 : vector<2x32xf32>
    %cst_38 = arith.constant dense<0.000000e+00> : vector<2x96xf32>
    %192 = tpu.matmul %191, %39, %cst_38 {dimension_numbers = #tpu.dot_dimension_numbers<[1], [0], [0], [1], [0, 0, 1, 1], [], []>} : vector<2x32xf32>, vector<32x96xf32>, vector<2x96xf32> -> vector<2x96xf32>
    %193 = vector.broadcast %40 : vector<1x96xf32> to vector<2x96xf32>
    %194 = arith.addf %192, %193 : vector<2x96xf32>
    %195 = vector.extract_strided_slice %38 {offsets = [10, 0], sizes = [2, 96], strides = [1, 1]} : vector<16x96xf32> to vector<2x96xf32>
    %196 = vector.extract_strided_slice %195 {offsets = [0, 0], sizes = [2, 32], strides = [1, 1]} : vector<2x96xf32> to vector<2x32xf32>
    %197 = vector.extract_strided_slice %194 {offsets = [0, 0], sizes = [2, 32], strides = [1, 1]} : vector<2x96xf32> to vector<2x32xf32>
    %198 = arith.addf %196, %197 : vector<2x32xf32>
    %199 = arith.negf %198 : vector<2x32xf32>
    %200 = math.exp %199 : vector<2x32xf32>
    %cst_39 = arith.constant 1.000000e+00 : f32
    %201 = vector.broadcast %cst_39 : f32 to vector<2x32xf32>
    %202 = arith.addf %201, %200 : vector<2x32xf32>
    %203 = arith.divf %201, %202 : vector<2x32xf32>
    %204 = vector.extract_strided_slice %195 {offsets = [0, 32], sizes = [2, 32], strides = [1, 1]} : vector<2x96xf32> to vector<2x32xf32>
    %205 = vector.extract_strided_slice %194 {offsets = [0, 32], sizes = [2, 32], strides = [1, 1]} : vector<2x96xf32> to vector<2x32xf32>
    %206 = arith.addf %204, %205 : vector<2x32xf32>
    %207 = arith.negf %206 : vector<2x32xf32>
    %208 = math.exp %207 : vector<2x32xf32>
    %cst_40 = arith.constant 1.000000e+00 : f32
    %209 = vector.broadcast %cst_40 : f32 to vector<2x32xf32>
    %210 = arith.addf %209, %208 : vector<2x32xf32>
    %211 = arith.divf %209, %210 : vector<2x32xf32>
    %212 = vector.extract_strided_slice %195 {offsets = [0, 64], sizes = [2, 32], strides = [1, 1]} : vector<2x96xf32> to vector<2x32xf32>
    %213 = vector.extract_strided_slice %194 {offsets = [0, 64], sizes = [2, 32], strides = [1, 1]} : vector<2x96xf32> to vector<2x32xf32>
    %214 = arith.mulf %203, %213 : vector<2x32xf32>
    %215 = arith.addf %212, %214 : vector<2x32xf32>
    %216 = math.tanh %215 : vector<2x32xf32>
    %cst_41 = arith.constant 1.000000e+00 : f32
    %217 = vector.broadcast %cst_41 : f32 to vector<2x32xf32>
    %218 = arith.subf %217, %211 : vector<2x32xf32>
    %219 = arith.mulf %218, %216 : vector<2x32xf32>
    %220 = arith.mulf %211, %191 : vector<2x32xf32>
    %221 = arith.addf %219, %220 : vector<2x32xf32>
    %cst_42 = arith.constant dense<0.000000e+00> : vector<2x96xf32>
    %222 = tpu.matmul %221, %39, %cst_42 {dimension_numbers = #tpu.dot_dimension_numbers<[1], [0], [0], [1], [0, 0, 1, 1], [], []>} : vector<2x32xf32>, vector<32x96xf32>, vector<2x96xf32> -> vector<2x96xf32>
    %223 = vector.broadcast %40 : vector<1x96xf32> to vector<2x96xf32>
    %224 = arith.addf %222, %223 : vector<2x96xf32>
    %225 = vector.extract_strided_slice %38 {offsets = [12, 0], sizes = [2, 96], strides = [1, 1]} : vector<16x96xf32> to vector<2x96xf32>
    %226 = vector.extract_strided_slice %225 {offsets = [0, 0], sizes = [2, 32], strides = [1, 1]} : vector<2x96xf32> to vector<2x32xf32>
    %227 = vector.extract_strided_slice %224 {offsets = [0, 0], sizes = [2, 32], strides = [1, 1]} : vector<2x96xf32> to vector<2x32xf32>
    %228 = arith.addf %226, %227 : vector<2x32xf32>
    %229 = arith.negf %228 : vector<2x32xf32>
    %230 = math.exp %229 : vector<2x32xf32>
    %cst_43 = arith.constant 1.000000e+00 : f32
    %231 = vector.broadcast %cst_43 : f32 to vector<2x32xf32>
    %232 = arith.addf %231, %230 : vector<2x32xf32>
    %233 = arith.divf %231, %232 : vector<2x32xf32>
    %234 = vector.extract_strided_slice %225 {offsets = [0, 32], sizes = [2, 32], strides = [1, 1]} : vector<2x96xf32> to vector<2x32xf32>
    %235 = vector.extract_strided_slice %224 {offsets = [0, 32], sizes = [2, 32], strides = [1, 1]} : vector<2x96xf32> to vector<2x32xf32>
    %236 = arith.addf %234, %235 : vector<2x32xf32>
    %237 = arith.negf %236 : vector<2x32xf32>
    %238 = math.exp %237 : vector<2x32xf32>
    %cst_44 = arith.constant 1.000000e+00 : f32
    %239 = vector.broadcast %cst_44 : f32 to vector<2x32xf32>
    %240 = arith.addf %239, %238 : vector<2x32xf32>
    %241 = arith.divf %239, %240 : vector<2x32xf32>
    %242 = vector.extract_strided_slice %225 {offsets = [0, 64], sizes = [2, 32], strides = [1, 1]} : vector<2x96xf32> to vector<2x32xf32>
    %243 = vector.extract_strided_slice %224 {offsets = [0, 64], sizes = [2, 32], strides = [1, 1]} : vector<2x96xf32> to vector<2x32xf32>
    %244 = arith.mulf %233, %243 : vector<2x32xf32>
    %245 = arith.addf %242, %244 : vector<2x32xf32>
    %246 = math.tanh %245 : vector<2x32xf32>
    %cst_45 = arith.constant 1.000000e+00 : f32
    %247 = vector.broadcast %cst_45 : f32 to vector<2x32xf32>
    %248 = arith.subf %247, %241 : vector<2x32xf32>
    %249 = arith.mulf %248, %246 : vector<2x32xf32>
    %250 = arith.mulf %241, %221 : vector<2x32xf32>
    %251 = arith.addf %249, %250 : vector<2x32xf32>
    %cst_46 = arith.constant dense<0.000000e+00> : vector<2x96xf32>
    %252 = tpu.matmul %251, %39, %cst_46 {dimension_numbers = #tpu.dot_dimension_numbers<[1], [0], [0], [1], [0, 0, 1, 1], [], []>} : vector<2x32xf32>, vector<32x96xf32>, vector<2x96xf32> -> vector<2x96xf32>
    %253 = vector.broadcast %40 : vector<1x96xf32> to vector<2x96xf32>
    %254 = arith.addf %252, %253 : vector<2x96xf32>
    %255 = vector.extract_strided_slice %38 {offsets = [14, 0], sizes = [2, 96], strides = [1, 1]} : vector<16x96xf32> to vector<2x96xf32>
    %256 = vector.extract_strided_slice %255 {offsets = [0, 0], sizes = [2, 32], strides = [1, 1]} : vector<2x96xf32> to vector<2x32xf32>
    %257 = vector.extract_strided_slice %254 {offsets = [0, 0], sizes = [2, 32], strides = [1, 1]} : vector<2x96xf32> to vector<2x32xf32>
    %258 = arith.addf %256, %257 : vector<2x32xf32>
    %259 = arith.negf %258 : vector<2x32xf32>
    %260 = math.exp %259 : vector<2x32xf32>
    %cst_47 = arith.constant 1.000000e+00 : f32
    %261 = vector.broadcast %cst_47 : f32 to vector<2x32xf32>
    %262 = arith.addf %261, %260 : vector<2x32xf32>
    %263 = arith.divf %261, %262 : vector<2x32xf32>
    %264 = vector.extract_strided_slice %255 {offsets = [0, 32], sizes = [2, 32], strides = [1, 1]} : vector<2x96xf32> to vector<2x32xf32>
    %265 = vector.extract_strided_slice %254 {offsets = [0, 32], sizes = [2, 32], strides = [1, 1]} : vector<2x96xf32> to vector<2x32xf32>
    %266 = arith.addf %264, %265 : vector<2x32xf32>
    %267 = arith.negf %266 : vector<2x32xf32>
    %268 = math.exp %267 : vector<2x32xf32>
    %cst_48 = arith.constant 1.000000e+00 : f32
    %269 = vector.broadcast %cst_48 : f32 to vector<2x32xf32>
    %270 = arith.addf %269, %268 : vector<2x32xf32>
    %271 = arith.divf %269, %270 : vector<2x32xf32>
    %272 = vector.extract_strided_slice %255 {offsets = [0, 64], sizes = [2, 32], strides = [1, 1]} : vector<2x96xf32> to vector<2x32xf32>
    %273 = vector.extract_strided_slice %254 {offsets = [0, 64], sizes = [2, 32], strides = [1, 1]} : vector<2x96xf32> to vector<2x32xf32>
    %274 = arith.mulf %263, %273 : vector<2x32xf32>
    %275 = arith.addf %272, %274 : vector<2x32xf32>
    %276 = math.tanh %275 : vector<2x32xf32>
    %cst_49 = arith.constant 1.000000e+00 : f32
    %277 = vector.broadcast %cst_49 : f32 to vector<2x32xf32>
    %278 = arith.subf %277, %271 : vector<2x32xf32>
    %279 = arith.mulf %278, %276 : vector<2x32xf32>
    %280 = arith.mulf %271, %251 : vector<2x32xf32>
    %281 = arith.addf %279, %280 : vector<2x32xf32>
    %c0_50 = arith.constant 0 : index
    %c0_51 = arith.constant 0 : index
    %282 = vector.load %arg7[%c0_50, %c0_51] : memref<32x32xf32, #tpu.memory_space<vmem>>, vector<32x32xf32>
    %cst_52 = arith.constant dense<0.000000e+00> : vector<2x32xf32>
    %283 = tpu.matmul %281, %282, %cst_52 {dimension_numbers = #tpu.dot_dimension_numbers<[1], [0], [0], [1], [0, 0, 1, 1], [], []>} : vector<2x32xf32>, vector<32x32xf32>, vector<2x32xf32> -> vector<2x32xf32>
    %c0_53 = arith.constant 0 : index
    %c0_54 = arith.constant 0 : index
    %284 = vector.load %arg8[%c0_53, %c0_54] : memref<1x32xf32, #tpu.memory_space<vmem>>, vector<1x32xf32>
    %285 = vector.broadcast %284 : vector<1x32xf32> to vector<2x32xf32>
    %286 = arith.addf %283, %285 : vector<2x32xf32>
    %cst_55 = arith.constant 0.000000e+00 : f32
    %287 = vector.broadcast %cst_55 : f32 to vector<2x32xf32>
    %288 = arith.maximumf %286, %287 : vector<2x32xf32>
    %c0_56 = arith.constant 0 : index
    %c0_57 = arith.constant 0 : index
    %289 = vector.load %arg9[%c0_56, %c0_57] : memref<32x4xf32, #tpu.memory_space<vmem>>, vector<32x4xf32>
    %cst_58 = arith.constant dense<0.000000e+00> : vector<2x4xf32>
    %290 = tpu.matmul %288, %289, %cst_58 {dimension_numbers = #tpu.dot_dimension_numbers<[1], [0], [0], [1], [0, 0, 1, 1], [], []>} : vector<2x32xf32>, vector<32x4xf32>, vector<2x4xf32> -> vector<2x4xf32>
    %c0_59 = arith.constant 0 : index
    %c0_60 = arith.constant 0 : index
    %291 = vector.load %arg10[%c0_59, %c0_60] : memref<1x4xf32, #tpu.memory_space<vmem>>, vector<1x4xf32>
    %292 = vector.broadcast %291 : vector<1x4xf32> to vector<2x4xf32>
    %293 = arith.addf %290, %292 : vector<2x4xf32>
    %c0_61 = arith.constant 0 : index
    %c0_62 = arith.constant 0 : index
    %294 = vector.load %arg11[%c0_61, %c0_62] : memref<2x4xf32, #tpu.memory_space<vmem>>, vector<2x4xf32>
    tpu.vector_store %arg11[%c0_61, %c0_62], %293 {strides = array<i32>} : memref<2x4xf32, #tpu.memory_space<vmem>>, vector<2x4xf32>,
    return
  }
}

</mosaic_0001>

<bundles_post_ra>
// kernel: mtad_gat_forward.1
= control target key start
LH: loop header
LB: loop body
LE: loop exit
PB: predicated region body
PF: predicated region fallthrough
CT: control target
= control target key end

     0   :  { %vm154_vm0 = vcmask 1042434   ;;  %vm44_vm1 = vcmask 1041409   ;;  %s2307_s0 = inlined_call_operand.vmem [shape: f32[2,8,4], index: 0, kind: input, shape index: {}]   ;;  %s2308_s1 = inlined_call_operand.vmem [shape: f32[28,4], index: 1, kind: input, shape index: {}]   ;;  %s2309_s2 = inlined_call_operand.vmem [shape: f32[1,4], index: 2, kind: input, shape index: {}]   ;;  %s2310_s3 = inlined_call_operand.vmem [shape: f32[4,96], index: 3, kind: input, shape index: {}]   ;;  %s2311_s4 = inlined_call_operand.vmem [shape: f32[1,96], index: 4, kind: input, shape index: {}]   ;;  %s2312_s5 = inlined_call_operand.vmem [shape: f32[32,96], index: 5, kind: input, shape index: {}]   ;;  %s2313_s6 = inlined_call_operand.vmem [shape: f32[1,96], index: 6, kind: input, shape index: {}]   ;;  %s2314_s7 = inlined_call_operand.vmem [shape: f32[32,32], index: 7, kind: input, shape index: {}]   ;;  %s2315_s8 = inlined_call_operand.vmem [shape: f32[1,32], index: 8, kind: input, shape index: {}]   ;;  %s2316_s9 = inlined_call_operand.vmem [shape: f32[32,4], index: 9, kind: input, shape index: {}]   ;;  %s2317_s10 = inlined_call_operand.vmem [shape: f32[1,4], index: 10, kind: input, shape index: {}]   ;;  %s2318_s11 = inlined_call_operand.hbm [shape: f32[2,4], index: 11, kind: output, shape index: {}]  }
   0x1   :  { %v1883_v0 = vld [vmem:[%s2307_s0] sm:$0xff]  ;;  %v1888_v1 = vld [vmem:[%s2307_s0 + $0x8] sm:$0xff] }
   0x2   :  { %v49_v2 = vrot.slane %v1883_v0, 1  ;;  %v43_v3 = vrot.slane %v1888_v1, 7 }
   0x4   :  { %v157_v4 = vsel %vm154_vm0, %v1888_v1, %v49_v2  ;;  %v1896_v5 = vsel %vm44_vm1, %v43_v3, %v1883_v0 }
   0x5   :  { %16 = vsyncpa [#allocation3], 0  ;;  %s1809_s21 = smov 4   ;;  %s1810_s22 = smov 8   ;;  %v50_v6 = vsel %vm44_vm1, %v1888_v1, %v49_v2  ;;  %v142_v7 = vrot.slane %v1883_v0, 6  ;;  %v54_v8 = vrot.slane %v1883_v0, 2  ;;  %v1912_v11 = vsel %vm154_vm0, %v43_v3, %v1883_v0 }
   0x6   :  { %158 = vrot.lane.b32.xlu1 %v157_v4, %s1809_s21  ;;  %74 = vrot.lane.b32.xlu0 %v1896_v5, %s1810_s22  ;;  %s1811_s0 = smov 12   ;;  %v55_v9 = vrot.slane %v1888_v1, 1  ;;  %vm216_vm2 = vcmask 1044484   ;;  %v143_v10 = vrot.slane %v1888_v1, 5  ;;  %vm187_vm3 = vcmask 1043459   ;;  %s1812_s23 = smov 16  }
   0x7   :  { %v1916_v12 = vsel %vm216_vm2, %v43_v3, %v1883_v0  ;;  %v219_v15 = vsel %vm216_vm2, %v1888_v1, %v49_v2  ;;  %v1931_v17 = vsel %vm187_vm3, %v43_v3, %v1883_v0  ;;  %v60_v19 = vrot.slane %v1883_v0, 3  ;;  %s1813_s24 = smov 20   ;;  %s1814_s25 = smov 24   ;;  %v292_v40 = vld [vmem:[%s2308_s1 + $0x18] sm:$0xf]  ;;  %v291_v41 = vld [vmem:[%s2308_s1 + $0x10] sm:$0xff] }
   0x8   :  { %v1921_v13 = vsel %vm154_vm0, %v143_v10, %v142_v7  ;;  %v1924_v14 = vsel %vm44_vm1, %v143_v10, %v142_v7  ;;  %v161_v16 = vsel %vm154_vm0, %v55_v9, %v54_v8  ;;  %v56_v18 = vsel %vm44_vm1, %v55_v9, %v54_v8  ;;  %v290_v43 = vld [vmem:[%s2308_s1 + $0x8] sm:$0xff]  ;;  %v289_v45 = vld [vmem:[%s2308_s1] sm:$0xff]  ;;  %s1817_s26 = smov 64  }
   0x9   :  { %v61_v20 = vrot.slane %v1888_v1, 2  ;;  %vm241_vm4 = vcmask 1045509   ;;  %v223_v23 = vsel %vm216_vm2, %v55_v9, %v54_v8  ;;  %v190_v24 = vsel %vm187_vm3, %v1888_v1, %v49_v2 }
   0xa   :  { %77 = vrot.lane.b32.xlu1 %v50_v6, %s1811_s0  ;;  %98 = vrot.lane.b32.xlu0 %v1896_v5, %s1809_s21  ;;  %v1940_v21 = vsel %vm241_vm4, %v43_v3, %v1883_v0  ;;  %v244_v25 = vsel %vm241_vm4, %v1888_v1, %v49_v2  ;;  %v86_v27 = vrot.slane %v1883_v0, 4  ;;  %v87_v28 = vrot.slane %v1888_v1, 3 }
   0xb   :  { %v165_v22 = vsel %vm154_vm0, %v61_v20, %v60_v19  ;;  %v62_v26 = vsel %vm44_vm1, %v61_v20, %v60_v19  ;;  %v227_v30 = vsel %vm216_vm2, %v61_v20, %v60_v19  ;;  %v194_v31 = vsel %vm187_vm3, %v55_v9, %v54_v8 }
   0xc   :  { %v169_v29 = vsel %vm154_vm0, %v87_v28, %v86_v27  ;;  %v248_v32 = vsel %vm241_vm4, %v55_v9, %v54_v8  ;;  %v88_v33 = vsel %vm44_vm1, %v87_v28, %v86_v27  ;;  %v113_v34 = vrot.slane %v1883_v0, 5 }
   0xd   :  { %v114_v35 = vrot.slane %v1888_v1, 4  ;;  %v231_v37 = vsel %vm216_vm2, %v87_v28, %v86_v27  ;;  %v198_v38 = vsel %vm187_vm3, %v61_v20, %v60_v19  ;;  %v252_v39 = vsel %vm241_vm4, %v61_v20, %v60_v19 }
   0xe   :  { %127 = vrot.lane.b32.xlu1 %v50_v6, %s1809_s21  ;;  %101 = vrot.lane.b32.xlu0 %v50_v6, %s1810_s22  ;;  %vm282_vm5 = vcmask 1043456   ;;  %v202_v44 = vsel %vm187_vm3, %v87_v28, %v86_v27  ;;  %vm119_vm6 = vcmask 31744   ;;  %vm92_vm7 = vcmask 64512  }
   0xf   :  { %v173_v36 = vsel %vm154_vm0, %v114_v35, %v113_v34  ;;  %v115_v42 = vsel %vm44_vm1, %v114_v35, %v113_v34  ;;  %1602 = vmatprep.subr.msk.mxu0 %vm282_vm5, %v292_v40  ;;  %v206_v46 = vsel %vm187_vm3, %v114_v35, %v113_v34  ;;  %vm66_vm8 = vcmask 97280  }
  0x10   :  { %1603 = vmatpush3.msk.msra.mxu0 %vm282_vm5, %v292_v40  ;;  %vm68_vm9 = vcmask 130048   ;;  %vm70_vm10 = vcmask 162816   ;;  %vm72_vm11 = vcmask 195584   ;;  %vm280_vm12 = vcmask 1041408  }
  0x11   :  { %1604 = vmatprep.subr.mxu0 %v291_v41  ;;  %vm284_vm13 = vcmask 1045504   ;;  %vm300_vm14 = vcmask 228352   ;;  %vm1816_vm15 = vmmov 0   ;;  %vm490_vm0 = vcmask 261120  }
  0x12   :  { %220 = vrot.lane.b32.xlu1 %v219_v15, %s1809_s21  ;;  %162 = vrot.lane.b32.xlu0 %v161_v16, %s1810_s22  ;;  %vm1499_vm1 = vcmask 25600  }
  0x13   :  { %1605 = vmatpush3.msra.mxu0 %v291_v41 }
  0x14   :  { %1606 = vmatprep.subr.mxu0 %v290_v43 }
  0x15   :  { %1607 = vmatpush3.msra.mxu0 %v290_v43 }
  0x16   :  { %104 = vrot.lane.b32.xlu1 %v56_v18, %s1811_s0  ;;  %80 = vrot.lane.b32.xlu0 %v56_v18, %s1812_s23 }
  0x17   :  { %1608 = vmatprep.subr.mxu0 %v289_v45 }
  0x18   :  { %1609 = vmatpush3.msra.mxu0 %v289_v45 }
  0x1a   :  { %166 = vrot.lane.b32.xlu1 %v165_v22, %s1811_s0  ;;  %130 = vrot.lane.b32.xlu0 %v56_v18, %s1810_s22 }
  0x1e   :  { %224 = vrot.lane.b32.xlu1 %v223_v23, %s1810_s22  ;;  %191 = vrot.lane.b32.xlu0 %v190_v24, %s1809_s21 }
  0x22   :  { %46 = vrot.lane.b32.xlu1 %v1896_v5, %s1811_s0  ;;  %245 = vrot.lane.b32.xlu0 %v244_v25, %s1809_s21 }
  0x26   :  { %107 = vrot.lane.b32.xlu1 %v62_v26, %s1812_s23  ;;  %83 = vrot.lane.b32.xlu0 %v62_v26, %s1813_s24 }
  0x2a   :  { %170 = vrot.lane.b32.xlu1 %v169_v29, %s1812_s23  ;;  %133 = vrot.lane.b32.xlu0 %v62_v26, %s1811_s0 }
  0x2e   :  { %228 = vrot.lane.b32.xlu1 %v227_v30, %s1811_s0  ;;  %195 = vrot.lane.b32.xlu0 %v194_v31, %s1810_s22 }
  0x32   :  { %51 = vrot.lane.b32.xlu1 %v50_v6, %s1812_s23  ;;  %249 = vrot.lane.b32.xlu0 %v248_v32, %s1810_s22 }
  0x36   :  { %110 = vrot.lane.b32.xlu1 %v88_v33, %s1813_s24  ;;  %89 = vrot.lane.b32.xlu0 %v88_v33, %s1814_s25 }
  0x3a   :  { %174 = vrot.lane.b32.xlu1 %v173_v36, %s1813_s24  ;;  %136 = vrot.lane.b32.xlu0 %v88_v33, %s1812_s23 }
  0x3e   :  { %232 = vrot.lane.b32.xlu1 %v231_v37, %s1812_s23  ;;  %199 = vrot.lane.b32.xlu0 %v198_v38, %s1811_s0 }
  0x42   :  { %57 = vrot.lane.b32.xlu1 %v56_v18, %s1813_s24  ;;  %253 = vrot.lane.b32.xlu0 %v252_v39, %s1811_s0 }
  0x46   :  { %139 = vrot.lane.b32.xlu1 %v115_v42, %s1813_s24  ;;  %116 = vrot.lane.b32.xlu0 %v115_v42, %s1814_s25 }
  0x4a   :  { %203 = vrot.lane.b32.xlu1 %v202_v44, %s1812_s23  ;;  %178 = vrot.lane.b32.xlu0 %v1921_v13, %s1814_s25  ;;  %s1819_s23 = smov [#allocation2]  }
  0x4e   :  { %145 = vrot.lane.b32.xlu1 %v1924_v14, %s1814_s25  ;;  %63 = vrot.lane.b32.xlu0 %v62_v26, %s1814_s25 }
  0x52   :  { %207 = vrot.lane.b32.xlu0 %v206_v46, %s1813_s24 }
  0x78   :  { %v159_v47 = vpop.permute.xlu1 %158  ;;  %v75_v48 = vpop.permute.xlu0 %74 }
  0x79   :  { %v181_v49 = vsel %vm119_vm6, %v1912_v11, %v159_v47  ;;  %v93_v19 = vsel %vm92_vm7, 0.0, %v75_v48 }
  0x7c   :  { %v78_v50 = vpop.permute.xlu1 %77  ;;  %v99_v51 = vpop.permute.xlu0 %98 }
  0x7d   :  { %v120_v20 = vsel %vm119_vm6, 0.0, %v99_v51  ;;  %v94_v24 = vsel %vm66_vm8, %v93_v19, %v78_v50  ;;  %v1815_v19 = vmov 0.0  }
  0x7e   :  { %1629 = vmatprep.subr.mxu0 %v1815_v19 }
  0x80   :  { %v128_v52 = vpop.permute.xlu1 %127  ;;  %v102_v53 = vpop.permute.xlu0 %101 }
  0x81   :  { %v148_v25 = vsel %vm119_vm6, %v1896_v5, %v128_v52  ;;  %v121_v26 = vsel %vm92_vm7, %v120_v20, %v102_v53  ;;  %v2083_v20 = vld [vmem:[%s2312_s5 + $0x18] sm:$0xff] }
  0x84   :  { %v221_v54 = vpop.permute.xlu1 %220  ;;  %v163_v55 = vpop.permute.xlu0 %162 }
  0x85   :  { %v235_v28 = vsel %vm119_vm6, %v1916_v12, %v221_v54  ;;  %v182_v29 = vsel %vm92_vm7, %v181_v49, %v163_v55 }
  0x88   :  { %v105_v56 = vpop.permute.xlu1 %104  ;;  %v81_v57 = vpop.permute.xlu0 %80 }
  0x89   :  { %v95_v30 = vsel %vm68_vm9, %v94_v24, %v81_v57  ;;  %v122_v32 = vsel %vm66_vm8, %v121_v26, %v105_v56  ;;  %v2104_v24 = vld [vmem:[%s2312_s5] sm:$0xff] }
  0x8c   :  { %v167_v58 = vpop.permute.xlu1 %166  ;;  %v131_v59 = vpop.permute.xlu0 %130 }
  0x8d   :  { %v149_v39 = vsel %vm92_vm7, %v148_v25, %v131_v59  ;;  %v1515_v25 = vld [vmem:[%s2309_s2] ss:$0 sm:$0xff]  ;;  %s1507_s2 = sshll.u32 %s1819_s23, 4  ;;  %s1508_s2 = int_to_ptr.vmem [resolvable:$true] %s1507_s2 }
  0x8e   :  { %p1792_p1 = scmp.lt.s32.totalorder %s1508_s2, %s1508_s2 }
  0x90   :  { %v225_v60 = vpop.permute.xlu1 %224  ;;  %v192_v61 = vpop.permute.xlu0 %191 }
  0x91   :  { %v236_v5 = vsel %vm92_vm7, %v235_v28, %v225_v60  ;;  %v210_v40 = vsel %vm119_vm6, %v1931_v17, %v192_v61 }
  0x94   :  { %v47_v62 = vpop.permute.xlu1 %46  ;;  %v246_v63 = vpop.permute.xlu0 %245 }
  0x95   :  { %v256_v27 = vsel %vm119_vm6, %v1940_v21, %v246_v63  ;;  %v183_v21 = vsel %vm66_vm8, %v182_v29, %v167_v58  ;;  %v67_v43 = vsel %vm66_vm8, 0.0, %v47_v62 }
  0x98   :  { %v108_v0 = vpop.permute.xlu1 %107  ;;  %v84_v1 = vpop.permute.xlu0 %83 }
  0x99   :  { %v96_v33 = vsel %vm70_vm10, %v95_v30, %v84_v1  ;;  %v123_v35 = vsel %vm68_vm9, %v122_v32, %v108_v0  ;;  %v1519_v32 = vld [vmem:[%s2311_s4] ss:$0 sm:$0xff]  ;;  %s1818_s4 = smov 96  }
  0x9c   :  { %v171_v2 = vpop.permute.xlu1 %170  ;;  %v134_v3 = vpop.permute.xlu0 %133 }
  0x9d   :  { %v150_v44 = vsel %vm66_vm8, %v149_v39, %v134_v3  ;;  %v184_v47 = vsel %vm68_vm9, %v183_v21, %v171_v2  ;;  %v2145_v21 = vld [vmem:[%s2313_s6] ss:$0 sm:$0xff] }
  0xa0   :  { %v229_v4 = vpop.permute.xlu1 %228  ;;  %v2015_v6 = vpop.permute.xlu0 %195 }
  0xa1   :  { %v237_v12 = vsel %vm66_vm8, %v236_v5, %v229_v4  ;;  %v211_v60 = vsel %vm92_vm7, %v210_v40, %v2015_v6 }
  0xa4   :  { %v52_v7 = vpop.permute.xlu1 %51  ;;  %v250_v8 = vpop.permute.xlu0 %249 }
  0xa5   :  { %v257_v31 = vsel %vm92_vm7, %v256_v27, %v250_v8  ;;  %v69_v48 = vsel %vm68_vm9, %v67_v43, %v52_v7 }
  0xa8   :  { %v111_v9 = vpop.permute.xlu1 %110  ;;  %v90_v10 = vpop.permute.xlu0 %89 }
  0xa9   :  { %v97_v36 = vsel %vm72_vm11, %v96_v33, %v90_v10  ;;  %v124_v41 = vsel %vm70_vm10, %v123_v35, %v111_v9 }
  0xaa   :  { %v263_v49 = vrot.slane %v97_v36, 6 }
  0xac   :  { %v175_v11 = vpop.permute.xlu1 %174  ;;  %v137_v13 = vpop.permute.xlu0 %136 }
  0xad   :  { %v151_v50 = vsel %vm68_vm9, %v150_v44, %v137_v13  ;;  %v185_v17 = vsel %vm70_vm10, %v184_v47, %v175_v11 }
  0xb0   :  { %v233_v14 = vpop.permute.xlu1 %232  ;;  %v200_v15 = vpop.permute.xlu0 %199 }
  0xb1   :  { %v238_v42 = vsel %vm68_vm9, %v237_v12, %v233_v14  ;;  %v212_v1 = vsel %vm66_vm8, %v211_v60, %v200_v15 }
  0xb2   :  { %v239_v51 = vsel %vm70_vm10, %v238_v42, 0.0 }
  0xb3   :  { %v240_v0 = vsel %vm72_vm11, %v239_v51, 0.0 }
  0xb4   :  { %v58_v16 = vpop.permute.xlu1 %57  ;;  %v254_v18 = vpop.permute.xlu0 %253  ;;  %v275_v10 = vrot.slane %v240_v0, 7 }
  0xb5   :  { %v258_v34 = vsel %vm66_vm8, %v257_v31, %v254_v18  ;;  %v71_v52 = vsel %vm70_vm10, %v69_v48, %v58_v16  ;;  %v387_v18 = vld [vmem:[%s2310_s3] sm:$0xf] }
  0xb6   :  { %v259_v45 = vsel %vm68_vm9, %v258_v34, 0.0  ;;  %1613 = vmatprep.subr.msk.mxu1 %vm282_vm5, %v387_v18 }
  0xb7   :  { %v260_v56 = vsel %vm70_vm10, %v259_v45, 0.0  ;;  %1614 = vmatpush3.msk.msra.mxu1 %vm282_vm5, %v387_v18 }
  0xb8   :  { %v140_v22 = vpop.permute.xlu1 %139  ;;  %v117_v23 = vpop.permute.xlu0 %116  ;;  %v261_v3 = vsel %vm72_vm11, %v260_v56, 0.0  ;;  %1618 = vmatprep.subr.mxu1 %v1815_v19 }
  0xb9   :  { %v125_v46 = vsel %vm72_vm11, %v124_v41, %v117_v23  ;;  %v152_v53 = vsel %vm70_vm10, %v151_v50, %v140_v22  ;;  %v278_v13 = vrot.slane %v261_v3, 6  ;;  %v2091_v22 = vld [vmem:[%s2312_s5 + $0x10] sm:$0xff]  ;;  %v2097_v23 = vld [vmem:[%s2312_s5 + $0x8] sm:$0xff] }
  0xba   :  { %v266_v57 = vrot.slane %v125_v46, 4 }
  0xbc   :  { %v204_v37 = vpop.permute.xlu1 %203  ;;  %v179_v38 = vpop.permute.xlu0 %178 }
  0xbd   :  { %v186_v61 = vsel %vm72_vm11, %v185_v17, %v179_v38  ;;  %v213_v4 = vsel %vm68_vm9, %v212_v1, %v204_v37 }
  0xbe   :  { %v272_v9 = vrot.slane %v186_v61, 1 }
  0xc0   :  { %v146_v54 = vpop.permute.xlu1 %145  ;;  %v64_v55 = vpop.permute.xlu0 %63 }
  0xc1   :  { %v153_v58 = vsel %vm72_vm11, %v152_v53, %v146_v54  ;;  %v73_v59 = vsel %vm72_vm11, %v71_v52, %v64_v55 }
  0xc2   :  { %v269_v62 = vrot.slane %v153_v58, 2  ;;  %v281_v63 = vsel %vm280_vm12, %v73_v59, %v263_v49 }
  0xc3   :  { %v283_v2 = vsel %vm282_vm5, %v281_v63, %v266_v57 }
  0xc4   :  { %v208_v7 = vpop.permute.xlu0 %207  ;;  %v285_v8 = vsel %vm284_vm13, %v283_v2, %v269_v62 }
  0xc5   :  { %v214_v6 = vsel %vm70_vm10, %v213_v4, %v208_v7  ;;  %1610 = vmatprep.mubr.msk.f32.mxu0 %vm300_vm14, %v285_v8 }
  0xc6   :  { %v215_v11 = vsel %vm72_vm11, %v214_v6, 0.0 }
  0xc7   :  { %v286_v14 = vsel %vm280_vm12, %v272_v9, %v215_v11 }
  0xc8   :  { %v287_v15 = vsel %vm282_vm5, %v286_v14, %v275_v10 }
  0xc9   :  { %v288_v16 = vsel %vm284_vm13, %v287_v15, %v278_v13 }
  0xca   :  { %1611 = vmatmul.mubr.msk.f32.vlgmr.msra.gmra.mxu0 %vm300_vm14, %v288_v16 }
  0xcb   :  { %1630 = vmatpush3.msra.mxu0 %v2083_v20  ;;  %1637 = vmatprep.mubr.msk.f32.mxu0 %vm1816_vm15, %v1815_v19 }
  0xcc   :  { %1631 = vmatprep.subr.mxu0 %v1815_v19 }
  0xcd   :  { %1632 = vmatpush3.msra.mxu0 %v2091_v22 }
  0xce   :  { %1633 = vmatprep.subr.mxu0 %v1815_v19 }
  0xcf   :  { %1634 = vmatpush3.msra.mxu0 %v2097_v23 }
  0xd0   :  { %1635 = vmatprep.subr.mxu0 %v1815_v19 }
  0xd1   :  { %1636 = vmatpush3.msra.mxu0 %v2104_v24 }
  0xd2   :  { %1651 = vmatprep.subr.mxu0 %v1815_v19 }
 0x18a   :  { %v1612_v26 = vpop.f32.mrf.mxu0 }
 0x18b   :  { %v382_v27 = vadd.f32 %v1612_v26, %v1515_v25 }
 0x18c   :  { %v376_v28 = vpop.f32.mrf.mxu0 }
 0x18d   :  { %v377_v29 = vadd.f32 %v1515_v25, %v376_v28  ;;  %v386_v31 = vmax.f32 %v382_v27, 0.0 }
 0x18f   :  { %v385_v30 = vmax.f32 %v377_v29, 0.0 }
 0x191   :  { %1615 = vmatprep.mubr.msk.f32.mxu1 %vm119_vm6, %v385_v30 }
 0x192   :  { %1616 = vmatmul.mubr.msk.f32.vlgmr.msra.gmra.mxu1 %vm119_vm6, %v386_v31 }
 0x193   :  { %1619 = vmatpush3.msra.mxu1 %v2083_v20  ;;  %1626 = vmatprep.mubr.msk.f32.mxu1 %vm1816_vm15, %v1815_v19 }
 0x194   :  { %1620 = vmatprep.subr.mxu1 %v1815_v19 }
 0x195   :  { %1621 = vmatpush3.msra.mxu1 %v2091_v22 }
 0x196   :  { %1622 = vmatprep.subr.mxu1 %v1815_v19 }
 0x197   :  { %1623 = vmatpush3.msra.mxu1 %v2097_v23 }
 0x198   :  { %1624 = vmatprep.subr.mxu1 %v1815_v19 }
 0x199   :  { %1625 = vmatpush3.msra.mxu1 %v2104_v24 }
 0x19a   :  { %1627 = vmatmul.mubr.f32.vlgmr.msra.gmra.mxu1 %v1815_v19  ;;  %1640 = vmatprep.subr.mxu1 %v1815_v19 }
 0x19b   :  { %1641 = vmatpush3.msra.mxu1 %v2083_v20  ;;  %1648 = vmatprep.mubr.msk.f32.mxu1 %vm1816_vm15, %v1815_v19 }
 0x19c   :  { %1642 = vmatprep.subr.mxu1 %v1815_v19 }
 0x19d   :  { %1643 = vmatpush3.msra.mxu1 %v2091_v22 }
 0x19e   :  { %1644 = vmatprep.subr.mxu1 %v1815_v19 }
 0x19f   :  { %1645 = vmatpush3.msra.mxu1 %v2097_v23 }
 0x1a0   :  { %1646 = vmatprep.subr.mxu1 %v1815_v19 }
 0x1a1   :  { %1647 = vmatpush3.msra.mxu1 %v2104_v24 }
 0x1a2   :  { %1662 = vmatprep.subr.mxu1 %v1815_v19 }
 0x252   :  { %v1617_v5 = vpop.f32.mrf.mxu1 }
 0x253   :  { %v2140_v33 = vadd.f32 %v1617_v5, %v1519_v32 }
 0x254   :  { %v470_v34 = vpop.f32.mrf.mxu1 }
 0x255   :  { %v2149_v37 = vadd.f32 %v1519_v32, %v470_v34 }
 0x25a   :  { %v560_v35 = vpop.f32.mrf.mxu1 }
 0x25b   :  { %v561_v12 = vadd.f32 %v2145_v21, %v560_v35 }
 0x25c   :  { %v1628_v36 = vpop.f32.mrf.mxu1 }
 0x25d   :  { %572 = vrot.lane.b32.xlu1 %v561_v12, %s1817_s26  ;;  %v564_v38 = vadd.f32 %v561_v12, %v2149_v37 }
 0x25f   :  { %v1524_v39 = vmul.f32 -1.442695, %v564_v38 }
 0x261   :  { %1739 = vpow2.f32 %v1524_v39 }
 0x26e   :  { %v1740_v40 = vpop.eup %1739 }
 0x26f   :  { %v568_v41 = vadd.f32 1.0, %v1740_v40 }
 0x271   :  { %1741 = vrcp.f32 %v568_v41 }
 0x27e   :  { %v1742_v42 = vpop.eup %1741 }
 0x27f   :  { %v582_v48 = vsub.f32 1.0, %v1742_v42  ;;  %v588_v50 = vmul.f32 0.0, %v1742_v42 }
 0x2cf   :  { %v573_v43 = vpop.permute.xlu1 %572 }
 0x2d0   :  { %v575_v44 = vmul.f32 %v1742_v42, %v573_v43 }
 0x2d2   :  { %577 = vrot.lane.b32.xlu0 %v575_v44, %s1817_s26 }
 0x344   :  { %v578_v45 = vpop.permute.xlu0 %577 }
 0x345   :  { %v580_v46 = vadd.f32 %v578_v45, %v2149_v37 }
 0x347   :  { %1743 = vtanh.f32 %v580_v46 }
 0x354   :  { %v1744_v47 = vpop.eup %1743 }
 0x355   :  { %584 = vrot.lane.b32.xlu1 %v1744_v47, %s1818_s4 }
 0x3c7   :  { %v585_v49 = vpop.permute.xlu1 %584 }
 0x3c8   :  { %v587_v17 = vmul.f32 %v585_v49, %v582_v48 }
 0x3ca   :  { %v589_v51 = vadd.f32 %v588_v50, %v587_v17 }
 0x3cc   :  { %591 = vrot.lane.b32.xlu0 %v589_v51, %s1818_s4  ;;  %v691_v3 = vrot.slane %v589_v51, 6 }
 0x43e   :  { %v592_v52 = vpop.permute.xlu0 %591 }
 0x43f   :  { %1638 = vmatmul.mubr.msk.f32.vlgmr.msra.gmra.mxu0 %vm490_vm0, %v592_v52 }
 0x440   :  { %1652 = vmatpush3.msra.mxu0 %v2083_v20  ;;  %1659 = vmatprep.mubr.msk.f32.mxu0 %vm1816_vm15, %v1815_v19 }
 0x441   :  { %1653 = vmatprep.subr.mxu0 %v1815_v19 }
 0x442   :  { %1654 = vmatpush3.msra.mxu0 %v2091_v22 }
 0x443   :  { %1655 = vmatprep.subr.mxu0 %v1815_v19 }
 0x444   :  { %1656 = vmatpush3.msra.mxu0 %v2097_v23 }
 0x445   :  { %1657 = vmatprep.subr.mxu0 %v1815_v19 }
 0x446   :  { %1658 = vmatpush3.msra.mxu0 %v2104_v24 }
 0x447   :  { %1673 = vmatprep.subr.mxu0 %v1815_v19 }
 0x4ff   :  { %v661_v53 = vpop.f32.mrf.mxu0 }
 0x500   :  { %v662_v54 = vadd.f32 %v2145_v21, %v661_v53 }
 0x501   :  { %v1639_v55 = vpop.f32.mrf.mxu0 }
 0x502   :  { %v666_v56 = vrot.slane %v662_v54, 6 }
 0x504   :  { %675 = vrot.lane.b32.xlu1 %v666_v56, %s1817_s26  ;;  %v668_v57 = vadd.f32 %v666_v56, %v2149_v37 }
 0x506   :  { %v1526_v58 = vmul.f32 -1.442695, %v668_v57 }
 0x508   :  { %1745 = vpow2.f32 %v1526_v58 }
 0x515   :  { %v1746_v59 = vpop.eup %1745 }
 0x516   :  { %v672_v60 = vadd.f32 1.0, %v1746_v59 }
 0x518   :  { %1747 = vrcp.f32 %v672_v60 }
 0x525   :  { %v1748_v61 = vpop.eup %1747 }
 0x526   :  { %v685_v4 = vsub.f32 1.0, %v1748_v61  ;;  %v693_v9 = vmul.f32 %v1748_v61, %v691_v3 }
 0x576   :  { %v676_v62 = vpop.permute.xlu1 %675 }
 0x577   :  { %v678_v63 = vmul.f32 %v1748_v61, %v676_v62 }
 0x579   :  { %680 = vrot.lane.b32.xlu0 %v678_v63, %s1817_s26 }
 0x5eb   :  { %v681_v0 = vpop.permute.xlu0 %680 }
 0x5ec   :  { %v683_v1 = vadd.f32 %v681_v0, %v2149_v37 }
 0x5ee   :  { %1749 = vtanh.f32 %v683_v1 }
 0x5fb   :  { %v1750_v2 = vpop.eup %1749 }
 0x5fc   :  { %687 = vrot.lane.b32.xlu1 %v1750_v2, %s1818_s4 }
 0x66e   :  { %v688_v7 = vpop.permute.xlu1 %687 }
 0x66f   :  { %v690_v8 = vmul.f32 %v688_v7, %v685_v4 }
 0x671   :  { %v694_v6 = vadd.f32 %v693_v9, %v690_v8 }
 0x673   :  { %v696_v10 = vrot.slane %v694_v6, 2  ;;  %v797_v34 = vrot.slane %v694_v6, 6 }
 0x675   :  { %697 = vrot.lane.b32.xlu0 %v696_v10, %s1818_s4 }
 0x6e7   :  { %v698_v11 = vpop.permute.xlu0 %697 }
 0x6e8   :  { %1649 = vmatmul.mubr.msk.f32.vlgmr.msra.gmra.mxu1 %vm490_vm0, %v698_v11 }
 0x6e9   :  { %1663 = vmatpush3.msra.mxu1 %v2083_v20  ;;  %1670 = vmatprep.mubr.msk.f32.mxu1 %vm1816_vm15, %v1815_v19 }
 0x6ea   :  { %1664 = vmatprep.subr.mxu1 %v1815_v19 }
 0x6eb   :  { %1665 = vmatpush3.msra.mxu1 %v2091_v22 }
 0x6ec   :  { %1666 = vmatprep.subr.mxu1 %v1815_v19 }
 0x6ed   :  { %1667 = vmatpush3.msra.mxu1 %v2097_v23 }
 0x6ee   :  { %1668 = vmatprep.subr.mxu1 %v1815_v19 }
 0x6ef   :  { %1669 = vmatpush3.msra.mxu1 %v2104_v24 }
 0x6f0   :  { %1684 = vmatprep.subr.mxu1 %v1815_v19 }
 0x7a8   :  { %v767_v13 = vpop.f32.mrf.mxu1 }
 0x7a9   :  { %v768_v14 = vadd.f32 %v2145_v21, %v767_v13 }
 0x7aa   :  { %v1650_v15 = vpop.f32.mrf.mxu1 }
 0x7ab   :  { %v772_v16 = vrot.slane %v768_v14, 4 }
 0x7ad   :  { %781 = vrot.lane.b32.xlu1 %v772_v16, %s1817_s26  ;;  %v774_v18 = vadd.f32 %v772_v16, %v2149_v37 }
 0x7af   :  { %v1528_v25 = vmul.f32 -1.442695, %v774_v18 }
 0x7b1   :  { %1751 = vpow2.f32 %v1528_v25 }
 0x7be   :  { %v1752_v26 = vpop.eup %1751 }
 0x7bf   :  { %v778_v27 = vadd.f32 1.0, %v1752_v26 }
 0x7c1   :  { %1753 = vrcp.f32 %v778_v27 }
 0x7ce   :  { %v1754_v28 = vpop.eup %1753 }
 0x7cf   :  { %v791_v35 = vsub.f32 1.0, %v1754_v28  ;;  %v799_v36 = vmul.f32 %v1754_v28, %v797_v34 }
 0x81f   :  { %v782_v29 = vpop.permute.xlu1 %781 }
 0x820   :  { %v784_v30 = vmul.f32 %v1754_v28, %v782_v29 }
 0x822   :  { %786 = vrot.lane.b32.xlu0 %v784_v30, %s1817_s26 }
 0x894   :  { %v787_v31 = vpop.permute.xlu0 %786 }
 0x895   :  { %v789_v32 = vadd.f32 %v787_v31, %v2149_v37 }
 0x897   :  { %1755 = vtanh.f32 %v789_v32 }
 0x8a4   :  { %v1756_v5 = vpop.eup %1755 }
 0x8a5   :  { %793 = vrot.lane.b32.xlu1 %v1756_v5, %s1818_s4 }
 0x917   :  { %v794_v12 = vpop.permute.xlu1 %793 }
 0x918   :  { %v796_v38 = vmul.f32 %v794_v12, %v791_v35 }
 0x91a   :  { %v800_v39 = vadd.f32 %v799_v36, %v796_v38 }
 0x91c   :  { %v802_v40 = vrot.slane %v800_v39, 4  ;;  %v903_v55 = vrot.slane %v800_v39, 6 }
 0x91e   :  { %803 = vrot.lane.b32.xlu0 %v802_v40, %s1818_s4 }
 0x990   :  { %v804_v41 = vpop.permute.xlu0 %803 }
 0x991   :  { %1660 = vmatmul.mubr.msk.f32.vlgmr.msra.gmra.mxu0 %vm490_vm0, %v804_v41 }
 0x992   :  { %1674 = vmatpush3.msra.mxu0 %v2083_v20  ;;  %1681 = vmatprep.mubr.msk.f32.mxu0 %vm1816_vm15, %v1815_v19 }
 0x993   :  { %1675 = vmatprep.subr.mxu0 %v1815_v19 }
 0x994   :  { %1676 = vmatpush3.msra.mxu0 %v2091_v22 }
 0x995   :  { %1677 = vmatprep.subr.mxu0 %v1815_v19 }
 0x996   :  { %1678 = vmatpush3.msra.mxu0 %v2097_v23 }
 0x997   :  { %1679 = vmatprep.subr.mxu0 %v1815_v19 }
 0x998   :  { %1680 = vmatpush3.msra.mxu0 %v2104_v24 }
 0x999   :  { %1695 = vmatprep.subr.mxu0 %v1815_v19 }
 0xa51   :  { %v873_v42 = vpop.f32.mrf.mxu0 }
 0xa52   :  { %v874_v43 = vadd.f32 %v2145_v21, %v873_v42 }
 0xa53   :  { %v1661_v44 = vpop.f32.mrf.mxu0 }
 0xa54   :  { %v878_v45 = vrot.slane %v874_v43, 2 }
 0xa56   :  { %887 = vrot.lane.b32.xlu1 %v878_v45, %s1817_s26  ;;  %v880_v46 = vadd.f32 %v878_v45, %v2149_v37 }
 0xa58   :  { %v1530_v47 = vmul.f32 -1.442695, %v880_v46 }
 0xa5a   :  { %1757 = vpow2.f32 %v1530_v47 }
 0xa67   :  { %v1758_v48 = vpop.eup %1757 }
 0xa68   :  { %v884_v49 = vadd.f32 1.0, %v1758_v48 }
 0xa6a   :  { %1759 = vrcp.f32 %v884_v49 }
 0xa77   :  { %v1760_v50 = vpop.eup %1759 }
 0xa78   :  { %v897_v56 = vsub.f32 1.0, %v1760_v50  ;;  %v905_v58 = vmul.f32 %v1760_v50, %v903_v55 }
 0xac8   :  { %v888_v17 = vpop.permute.xlu1 %887 }
 0xac9   :  { %v890_v51 = vmul.f32 %v1760_v50, %v888_v17 }
 0xacb   :  { %892 = vrot.lane.b32.xlu0 %v890_v51, %s1817_s26 }
 0xb3d   :  { %v893_v52 = vpop.permute.xlu0 %892 }
 0xb3e   :  { %v895_v53 = vadd.f32 %v893_v52, %v2149_v37 }
 0xb40   :  { %1761 = vtanh.f32 %v895_v53 }
 0xb4d   :  { %v1762_v54 = vpop.eup %1761 }
 0xb4e   :  { %899 = vrot.lane.b32.xlu1 %v1762_v54, %s1818_s4 }
 0xbc0   :  { %v900_v57 = vpop.permute.xlu1 %899 }
 0xbc1   :  { %v902_v59 = vmul.f32 %v900_v57, %v897_v56 }
 0xbc3   :  { %v906_v60 = vadd.f32 %v905_v58, %v902_v59 }
 0xbc5   :  { %v908_v61 = vrot.slane %v906_v60, 6 }
 0xbc7   :  { %909 = vrot.lane.b32.xlu0 %v908_v61, %s1818_s4 }
 0xc39   :  { %v910_v62 = vpop.permute.xlu0 %909 }
 0xc3a   :  { %1671 = vmatmul.mubr.msk.f32.vlgmr.msra.gmra.mxu1 %vm490_vm0, %v910_v62 }
 0xc3b   :  { %1685 = vmatpush3.msra.mxu1 %v2083_v20  ;;  %1692 = vmatprep.mubr.msk.f32.mxu1 %vm1816_vm15, %v1815_v19 }
 0xc3c   :  { %1686 = vmatprep.subr.mxu1 %v1815_v19 }
 0xc3d   :  { %1687 = vmatpush3.msra.mxu1 %v2091_v22 }
 0xc3e   :  { %1688 = vmatprep.subr.mxu1 %v1815_v19 }
 0xc3f   :  { %1689 = vmatpush3.msra.mxu1 %v2097_v23 }
 0xc40   :  { %1690 = vmatprep.subr.mxu1 %v1815_v19 }
 0xc41   :  { %1691 = vmatpush3.msra.mxu1 %v2104_v24 }
 0xc42   :  { %1706 = vmatprep.subr.mxu1 %v1815_v19 }
 0xcfa   :  { %v979_v37 = vpop.f32.mrf.mxu1 }
 0xcfb   :  { %v980_v63 = vadd.f32 %v2145_v21, %v979_v37 }
 0xcfc   :  { %v1672_v0 = vpop.f32.mrf.mxu1 }
 0xcfd   :  { %991 = vrot.lane.b32.xlu1 %v980_v63, %s1817_s26  ;;  %v983_v1 = vadd.f32 %v980_v63, %v2140_v33 }
 0xcff   :  { %v1532_v2 = vmul.f32 -1.442695, %v983_v1 }
 0xd01   :  { %1763 = vpow2.f32 %v1532_v2 }
 0xd0e   :  { %v1764_v3 = vpop.eup %1763 }
 0xd0f   :  { %v987_v4 = vadd.f32 1.0, %v1764_v3 }
 0xd11   :  { %1765 = vrcp.f32 %v987_v4 }
 0xd1e   :  { %v1766_v7 = vpop.eup %1765 }
 0xd1f   :  { %v1001_v13 = vsub.f32 1.0, %v1766_v7  ;;  %v1008_v15 = vmul.f32 %v1766_v7, %v908_v61 }
 0xd6f   :  { %v992_v8 = vpop.permute.xlu1 %991 }
 0xd70   :  { %v994_v9 = vmul.f32 %v1766_v7, %v992_v8 }
 0xd72   :  { %996 = vrot.lane.b32.xlu0 %v994_v9, %s1817_s26 }
 0xde4   :  { %v997_v6 = vpop.permute.xlu0 %996 }
 0xde5   :  { %v999_v10 = vadd.f32 %v997_v6, %v2140_v33 }
 0xde7   :  { %1767 = vtanh.f32 %v999_v10 }
 0xdf4   :  { %v1768_v11 = vpop.eup %1767 }
 0xdf5   :  { %1003 = vrot.lane.b32.xlu1 %v1768_v11, %s1818_s4 }
 0xe67   :  { %v1004_v14 = vpop.permute.xlu1 %1003 }
 0xe68   :  { %v1006_v16 = vmul.f32 %v1004_v14, %v1001_v13 }
 0xe6a   :  { %v1009_v18 = vadd.f32 %v1008_v15, %v1006_v16  ;;  %v1329_v15 = vld [vmem:[%s2314_s7 + $0x10] sm:$0xff]  ;;  %v1328_v16 = vld [vmem:[%s2314_s7 + $0x8] sm:$0xff] }
 0xe6c   :  { %1011 = vrot.lane.b32.xlu0 %v1009_v18, %s1818_s4  ;;  %v1111_v12 = vrot.slane %v1009_v18, 6 }
 0xede   :  { %v1012_v25 = vpop.permute.xlu0 %1011 }
 0xedf   :  { %1682 = vmatmul.mubr.msk.f32.vlgmr.msra.gmra.mxu0 %vm490_vm0, %v1012_v25  ;;  %v1418_v25 = vld [vmem:[%s2316_s9 + $0x18] sm:$0xff] }
 0xee0   :  { %1696 = vmatpush3.msra.mxu0 %v2083_v20  ;;  %1703 = vmatprep.mubr.msk.f32.mxu0 %vm1816_vm15, %v1815_v19 }
 0xee1   :  { %1697 = vmatprep.subr.mxu0 %v1815_v19 }
 0xee2   :  { %1698 = vmatpush3.msra.mxu0 %v2091_v22 }
 0xee3   :  { %1699 = vmatprep.subr.mxu0 %v1815_v19 }
 0xee4   :  { %1700 = vmatpush3.msra.mxu0 %v2097_v23 }
 0xee5   :  { %1701 = vmatprep.subr.mxu0 %v1815_v19 }
 0xee6   :  { %1702 = vmatpush3.msra.mxu0 %v2104_v24 }
 0xee7   :  { %1717 = vmatprep.subr.mxu0 %v1815_v19 }
 0xf9f   :  { %v1081_v26 = vpop.f32.mrf.mxu0 }
 0xfa0   :  { %v1082_v20 = vadd.f32 %v2145_v21, %v1081_v26 }
 0xfa1   :  { %v1683_v27 = vpop.f32.mrf.mxu0 }
 0xfa2   :  { %v1086_v28 = vrot.slane %v1082_v20, 6 }
 0xfa4   :  { %1095 = vrot.lane.b32.xlu1 %v1086_v28, %s1817_s26  ;;  %v1088_v29 = vadd.f32 %v1086_v28, %v2140_v33 }
 0xfa6   :  { %v1534_v22 = vmul.f32 -1.442695, %v1088_v29 }
 0xfa8   :  { %1769 = vpow2.f32 %v1534_v22 }
 0xfb5   :  { %v1770_v30 = vpop.eup %1769 }
 0xfb6   :  { %v1092_v31 = vadd.f32 1.0, %v1770_v30 }
 0xfb8   :  { %1771 = vrcp.f32 %v1092_v31 }
 0xfc5   :  { %v1772_v23 = vpop.eup %1771 }
 0xfc6   :  { %v1105_v36 = vsub.f32 1.0, %v1772_v23  ;;  %v1113_v40 = vmul.f32 %v1772_v23, %v1111_v12 }
0x1016   :  { %v1096_v32 = vpop.permute.xlu1 %1095 }
0x1017   :  { %v1098_v5 = vmul.f32 %v1772_v23, %v1096_v32  ;;  %v1417_v23 = vld [vmem:[%s2316_s9 + $0x10] sm:$0xff]  ;;  %v1416_v32 = vld [vmem:[%s2316_s9 + $0x8] sm:$0xff] }
0x1019   :  { %1100 = vrot.lane.b32.xlu0 %v1098_v5, %s1817_s26  ;;  %v1415_v5 = vld [vmem:[%s2316_s9] sm:$0xff]  ;;  %s1787_s9 = scalar_lea.vmem %s1508_s2, 32 }
0x101a   :  { %p1788_p0 = scmp.ne.s32.totalorder %s1508_s2, %s1787_s9  ;;  %p1793_p2 = scmp.lt.s32.totalorder %s1787_s9, %s1787_s9 }
0x101c   :  { %p1794_p3 = por %p1793_p2, %p1792_p1 }
0x101e   :  { %p1795_p4 = pnand %p1794_p3, %p1788_p0 }
0x108b   :  { %v1101_v24 = vpop.permute.xlu0 %1100 }
0x108c   :  { %v1103_v34 = vadd.f32 %v1101_v24, %v2140_v33  ;;  %v1539_v24 = vld [vmem:[%s2315_s8] ss:$0 sm:$0xff] }
0x108e   :  { %1773 = vtanh.f32 %v1103_v34 }
0x109b   :  { %v1774_v35 = vpop.eup %1773 }
0x109c   :  { %1107 = vrot.lane.b32.xlu1 %v1774_v35, %s1818_s4 }
0x110e   :  { %v1108_v38 = vpop.permute.xlu1 %1107 }
0x110f   :  { %v1110_v39 = vmul.f32 %v1108_v38, %v1105_v36  ;;  %v1541_v38 = vld [vmem:[%s2317_s10] ss:$0 sm:$0xff] }
0x1111   :  { %v1114_v41 = vadd.f32 %v1113_v40, %v1110_v39 }
0x1113   :  { %v1116_v42 = vrot.slane %v1114_v41, 2  ;;  %v1217_v57 = vrot.slane %v1114_v41, 6 }
0x1115   :  { %1117 = vrot.lane.b32.xlu0 %v1116_v42, %s1818_s4 }
0x1187   :  { %v1118_v43 = vpop.permute.xlu0 %1117 }
0x1188   :  { %1693 = vmatmul.mubr.msk.f32.vlgmr.msra.gmra.mxu1 %vm490_vm0, %v1118_v43 }
0x1189   :  { %1714 = vmatprep.mubr.msk.f32.mxu1 %vm1816_vm15, %v1815_v19 }
0x1248   :  { %v1187_v44 = vpop.f32.mrf.mxu1 }
0x1249   :  { %v1188_v45 = vadd.f32 %v2145_v21, %v1187_v44 }
0x124a   :  { %v1694_v46 = vpop.f32.mrf.mxu1 }
0x124b   :  { %v1192_v47 = vrot.slane %v1188_v45, 4 }
0x124d   :  { %1201 = vrot.lane.b32.xlu1 %v1192_v47, %s1817_s26  ;;  %v1194_v48 = vadd.f32 %v1192_v47, %v2140_v33 }
0x124f   :  { %v1536_v49 = vmul.f32 -1.442695, %v1194_v48 }
0x1251   :  { %1775 = vpow2.f32 %v1536_v49 }
0x125e   :  { %v1776_v50 = vpop.eup %1775 }
0x125f   :  { %v1198_v17 = vadd.f32 1.0, %v1776_v50 }
0x1261   :  { %1777 = vrcp.f32 %v1198_v17 }
0x126e   :  { %v1778_v51 = vpop.eup %1777 }
0x126f   :  { %v1211_v58 = vsub.f32 1.0, %v1778_v51  ;;  %v1219_v60 = vmul.f32 %v1778_v51, %v1217_v57 }
0x12bf   :  { %v1202_v52 = vpop.permute.xlu1 %1201 }
0x12c0   :  { %v1204_v53 = vmul.f32 %v1778_v51, %v1202_v52 }
0x12c2   :  { %1206 = vrot.lane.b32.xlu0 %v1204_v53, %s1817_s26 }
0x1334   :  { %v1207_v54 = vpop.permute.xlu0 %1206 }
0x1335   :  { %v1209_v55 = vadd.f32 %v1207_v54, %v2140_v33 }
0x1337   :  { %1779 = vtanh.f32 %v1209_v55 }
0x1344   :  { %v1780_v56 = vpop.eup %1779 }
0x1345   :  { %1213 = vrot.lane.b32.xlu1 %v1780_v56, %s1818_s4 }
0x13b7   :  { %v1214_v59 = vpop.permute.xlu1 %1213 }
0x13b8   :  { %v1216_v61 = vmul.f32 %v1214_v59, %v1211_v58 }
0x13ba   :  { %v1220_v62 = vadd.f32 %v1219_v60, %v1216_v61 }
0x13bc   :  { %v1222_v37 = vrot.slane %v1220_v62, 4  ;;  %v1323_v26 = vrot.slane %v1220_v62, 6 }
0x13be   :  { %1223 = vrot.lane.b32.xlu0 %v1222_v37, %s1818_s4 }
0x1430   :  { %v1224_v63 = vpop.permute.xlu0 %1223 }
0x1431   :  { %1704 = vmatmul.mubr.msk.f32.vlgmr.msra.gmra.mxu0 %vm490_vm0, %v1224_v63 }
0x1432   :  { %1725 = vmatprep.mubr.msk.f32.mxu0 %vm1816_vm15, %v1815_v19  ;;  %1718 = vmatpush3.msra.mxu0 %v1418_v25 }
0x1433   :  { %1719 = vmatprep.subr.mxu0 %v1815_v19 }
0x1434   :  { %1720 = vmatpush3.msra.mxu0 %v1417_v23 }
0x1435   :  { %1721 = vmatprep.subr.mxu0 %v1815_v19 }
0x1436   :  { %1722 = vmatpush3.msra.mxu0 %v1416_v32 }
0x1437   :  { %1723 = vmatprep.subr.mxu0 %v1815_v19 }
0x1438   :  { %1724 = vmatpush3.msra.mxu0 %v1415_v5 }
0x14f1   :  { %v1293_v0 = vpop.f32.mrf.mxu0 }
0x14f2   :  { %v1294_v1 = vadd.f32 %v2145_v21, %v1293_v0  ;;  %v1330_v21 = vld [vmem:[%s2314_s7 + $0x18] sm:$0xff] }
0x14f3   :  { %v1705_v2 = vpop.f32.mrf.mxu0  ;;  %1707 = vmatpush3.msra.mxu1 %v1330_v21 }
0x14f4   :  { %v1298_v3 = vrot.slane %v1294_v1, 2  ;;  %1708 = vmatprep.subr.mxu1 %v1815_v19 }
0x14f5   :  { %1709 = vmatpush3.msra.mxu1 %v1329_v15 }
0x14f6   :  { %1307 = vrot.lane.b32.xlu1 %v1298_v3, %s1817_s26  ;;  %v1300_v4 = vadd.f32 %v1298_v3, %v2140_v33  ;;  %1710 = vmatprep.subr.mxu1 %v1815_v19 }
0x14f7   :  { %1711 = vmatpush3.msra.mxu1 %v1328_v16 }
0x14f8   :  { %v1538_v7 = vmul.f32 -1.442695, %v1300_v4  ;;  %1712 = vmatprep.subr.mxu1 %v1815_v19 }
0x14fa   :  { %1781 = vpow2.f32 %v1538_v7 }
0x1507   :  { %v1782_v8 = vpop.eup %1781 }
0x1508   :  { %v1304_v9 = vadd.f32 1.0, %v1782_v8 }
0x150a   :  { %1783 = vrcp.f32 %v1304_v9 }
0x1517   :  { %v1784_v6 = vpop.eup %1783 }
0x1518   :  { %v1317_v20 = vsub.f32 1.0, %v1784_v6  ;;  %v1325_v28 = vmul.f32 %v1784_v6, %v1323_v26 }
0x1568   :  { %v1308_v10 = vpop.permute.xlu1 %1307 }
0x1569   :  { %v1310_v11 = vmul.f32 %v1784_v6, %v1308_v10 }
0x156b   :  { %1312 = vrot.lane.b32.xlu0 %v1310_v11, %s1817_s26 }
0x15dd   :  { %v1313_v13 = vpop.permute.xlu0 %1312 }
0x15de   :  { %v1315_v14 = vadd.f32 %v1313_v13, %v2140_v33  ;;  %v1327_v33 = vld [vmem:[%s2314_s7] sm:$0xff] }
0x15df   :  { %1713 = vmatpush3.msra.mxu1 %v1327_v33 }
0x15e0   :  { %1785 = vtanh.f32 %v1315_v14 }
0x15ed   :  { %v1786_v18 = vpop.eup %1785 }
0x15ee   :  { %1319 = vrot.lane.b32.xlu1 %v1786_v18, %s1818_s4 }
0x1660   :  { %v1320_v27 = vpop.permute.xlu1 %1319 }
0x1661   :  { %v1322_v29 = vmul.f32 %v1320_v27, %v1317_v20 }
0x1663   :  { %v1326_v22 = vadd.f32 %v1325_v28, %v1322_v29 }
0x1665   :  { %v1339_v30 = vrot.slane %v1326_v22, 6 }
0x1667   :  { %1340 = vrot.lane.b32.xlu0 %v1339_v30, %s1818_s4 }
0x16d9   :  { %v1341_v31 = vpop.permute.xlu0 %1340 }
0x16da   :  { %1715 = vmatmul.mubr.msk.f32.vlgmr.msra.gmra.mxu1 %vm490_vm0, %v1341_v31 }
0x179a   :  { %v1410_v34 = vpop.f32.mrf.mxu1 }
0x179b   :  { %v1411_v35 = vadd.f32 %v1539_v24, %v1410_v34 }
0x179c   :  { %v1716_v12 = vpop.f32.mrf.mxu1 }
0x179d   :  { %v1414_v36 = vmax.f32 %v1411_v35, 0.0 }
0x179f   :  { %1726 = vmatmul.mubr.msk.f32.vlgmr.msra.gmra.mxu0 %vm490_vm0, %v1414_v36 }
0x185f   :  { %v1495_v19 = vpop.f32.mrf.mxu0 }
0x1860   :  { %v1496_v39 = vadd.f32 %v1541_v38, %v1495_v19 }
0x1861   :  { %v1727_v40 = vpop.f32.mrf.mxu0 }
0x1862   :  { %1500 = vst.msk [vmem:[#allocation2] sm:$0x3] %vm1499_vm1, %v1496_v39 }
0x1863   :  { %1798 = shalt.err (!%p1795_p4)
}
0x1864   :  { %1510 = dma.vmem_to_hbm [thread:$0]  %s1508_s2, 32, %s2318_s11, [#allocation3]  }
0x1865   :  { %1807 = dma.done.wait [#allocation3], 32  }
0x1866   :  { %1808 = vsyncadd [#allocation3], 4294967264 }
0x1867   :  { %1514 = vsyncpa [#allocation3], 1 }

</bundles_post_ra>
